<compile_context>
chip_gen: v7x
topology: tpu7x:2x2x1
jax: 0.10.0
libtpu: 0.0.40
codegen_flags: <defaults>
</compile_context>

<pallas_src>
import functools

import numpy as np
import jax
import jax.numpy as jnp
from jax import lax
from jax.experimental import pallas as pl
from jax.experimental.pallas import tpu as pltpu


# ----------------------------------------------------------------------------
# Kernel: fused 3x3 conv (single K-deep matmul) + bias + LeakyReLU(0.1)
#         + channel-concat with the input, all in flattened NCHW layout.
# ----------------------------------------------------------------------------
def _one_conv_kernel(x_ref, w_ref, b_ref, m_ref, out_ref, col_ref, *,
                     H, W, Cin, Cout, BT, neg_slope):
    """
    x_ref  : (BT, Cin, H*W)       f32   flattened NCHW input block
    w_ref  : (Cout, 9*Cin)        bf16  tap-major conv weights (VMEM resident)
    b_ref  : (Cout, 1)            f32   bias (VMEM resident)
    m_ref  : (9, 1, H*W)          f32   {0,1} zero-padding masks, one per tap
    out_ref: (BT, Cin+Cout, H*W)  f32   [x | leaky(conv(x))] along channels
    col_ref: (9*Cin, H*W)         bf16  VMEM im2col scratch
    """
    HW = H * W
    w_all = w_ref[...]                       # (Cout, 9*Cin) bf16
    bias = b_ref[...]                        # (Cout, 1)     f32

    for bt in range(BT):                     # static, unrolled over packed images
        x_img = x_ref[bt]                    # (Cin, HW) f32 — single VMEM read

        # Fused torch.cat((x, out), dim=1): passthrough channels, exact copy,
        # lane-dense store (minor dim = full H*W).
        out_ref[bt, :Cin, :] = x_img

        # Build the bf16 im2col scratch.  Each 3x3 tap is a circular shift of
        # the flattened image along the lane axis (in-VMEM slice+concat), with
        # out-of-image positions zeroed by a precomputed mask -> this IS the
        # zero padding, no padded copy of x ever exists in HBM.
        for ky in range(3):
            for kx in range(3):
                t = 3 * ky + kx
                s = (ky - 1) * W + (kx - 1)          # flattened spatial offset
                if s == 0:
                    tap = x_img
                else:
                    # tap[i] = x_img[(i + s) mod HW]; wrapped entries are
                    # zeroed by the border mask below.
                    tap = jnp.concatenate([x_img[:, s:], x_img[:, :s]], axis=1)
                tap = tap * m_ref[t]                 # zero the padded border
                col_ref[t * Cin:(t + 1) * Cin, :] = tap.astype(jnp.bfloat16)

        # One K-deep MXU matmul: (Cout, 9*Cin) @ (9*Cin, HW), f32 accumulation.
        acc = jnp.dot(w_all, col_ref[...], preferred_element_type=jnp.float32)

        # f32 epilogue: bias + LeakyReLU(0.1); lane-dense store of conv rows.
        y = acc + bias
        y = jnp.where(y >= 0.0, y, neg_slope * y)
        out_ref[bt, Cin:, :] = y


def _pick_batch_tile(B, per_img_bytes, target_bytes=2 << 20):
    """Largest divisor of B whose per-step HBM I/O stays under `target_bytes`,
    keeping at least two grid steps when B > 1 (pipelining / megacore)."""
    best = 1
    for d in range(1, B + 1):
        if B % d != 0:
            continue
        if d * per_img_bytes > target_bytes:
            break
        if d == B and B > 1:
            continue                     # keep >= 2 grid steps when possible
        best = d
    return best


def one_conv_forward(x, w, b, *, neg_slope=0.1):
    """one_conv forward (matches the PyTorch module).

    x : (B, Cin, H, W)    float32 (NCHW, like PyTorch)
    w : (Cout, Cin, 3, 3) float32 (OIHW, like PyTorch)
    b : (Cout,)           float32
    returns (B, Cin+Cout, H, W) float32
    """
    B, Cin, H, W = x.shape
    Cout = w.shape[0]
    Call = Cin + Cout
    HW = H * W

    # Free layout changes only: merge H,W into one lane-dense minor dim.
    x2 = x.reshape(B, Cin, HW).astype(jnp.float32)

    # OIHW -> (Cout, 9*Cin) tap-major, cast once to bf16 for the MXU.
    # w_all[o, (3*ky+kx)*Cin + c] = w[o, c, ky, kx]  (matches im2col rows).
    w_all = jnp.transpose(w, (0, 2, 3, 1)).reshape(Cout, 9 * Cin).astype(jnp.bfloat16)
    bias = b.reshape(Cout, 1).astype(jnp.float32)

    # Precompute the 9 zero-padding border masks (trace-time numpy, tiny).
    hh, ww = np.meshgrid(np.arange(H), np.arange(W), indexing="ij")
    masks_np = np.zeros((9, 1, HW), np.float32)
    for ky in range(3):
        for kx in range(3):
            oy, ox = ky - 1, kx - 1
            ok = (hh + oy >= 0) & (hh + oy < H) & (ww + ox >= 0) & (ww + ox < W)
            masks_np[3 * ky + kx, 0] = ok.reshape(-1).astype(np.float32)
    masks = jnp.asarray(masks_np)

    # ---- step sizing & VMEM budget ----------------------------------------
    per_img_io = (Cin + Call) * HW * 4              # HBM bytes per image (in+out)
    BT = _pick_batch_tile(B, per_img_io)
    grid = (B // BT,)

    col_bytes = 9 * Cin * HW * 2                    # bf16 im2col scratch
    w_bytes = Cout * 9 * Cin * 2
    b_bytes = max(Cout, 8) * 128 * 4                # padded to a lane tile
    m_bytes = 9 * 8 * HW * 4                        # (1,HW) rows pad to 8 sublanes
    tmp_bytes = (3 * Cin + 2 * Cout) * HW * 4       # shift/mask/cast temporaries
    vmem_needed = (2 * BT * per_img_io              # double-buffered in+out blocks
                   + 2 * (w_bytes + b_bytes + m_bytes)
                   + col_bytes + tmp_bytes)
    try:
        phys_vmem = int(pltpu.get_tpu_info().vmem_capacity_bytes)
    except Exception:
        phys_vmem = 64 * 1024 * 1024                # conservative (v7x = 64 MiB)
    vmem_limit = int(min(max(vmem_needed + (4 << 20), 16 << 20),
                         (phys_vmem * 9) // 10))
    # TODO(synk): a single image whose (2*Cin+Cout)*H*W footprint exceeds the
    # VMEM budget (large full-frame inference, esp. v7x 64 MiB) still needs a
    # row-tiled variant with a one-row halo (manual DMA); typical iPASSR patch
    # sizes fit comfortably.

    kernel = functools.partial(_one_conv_kernel, H=H, W=W, Cin=Cin, Cout=Cout,
                               BT=BT, neg_slope=neg_slope)

    out2 = pl.pallas_call(
        kernel,
        out_shape=jax.ShapeDtypeStruct((B, Call, HW), jnp.float32),
        grid_spec=pltpu.PrefetchScalarGridSpec(
            num_scalar_prefetch=0,
            grid=grid,
            in_specs=[
                pl.BlockSpec((BT, Cin, HW), lambda i: (i, 0, 0)),
                pl.BlockSpec((Cout, 9 * Cin), lambda i: (0, 0)),
                pl.BlockSpec((Cout, 1), lambda i: (0, 0)),
                pl.BlockSpec((9, 1, HW), lambda i: (0, 0, 0)),
            ],
            out_specs=pl.BlockSpec((BT, Call, HW), lambda i: (i, 0, 0)),
            scratch_shapes=[pltpu.VMEM((9 * Cin, HW), jnp.bfloat16)],
        ),
        compiler_params=pltpu.CompilerParams(
            dimension_semantics=("parallel",),
            vmem_limit_bytes=vmem_limit,
        ),
    )(x2, w_all, bias, masks)

    # Free reshape back to NCHW spatial dims.
    return out2.reshape(B, Call, H, W)


# ----------------------------------------------------------------------------
if __name__ == "__main__":
    B, G0, G, H, W = 2, 64, 32, 16, 16   # iPASSR-like: G0 in-channels, G growth

    key = jax.random.PRNGKey(0)
    kx, kw, kb = jax.random.split(key, 3)
    scale = 1.0 / (9 * G0) ** 0.5
    x = jax.random.normal(kx, (B, G0, H, W), jnp.float32)
    w = jax.random.normal(kw, (G, G0, 3, 3), jnp.float32) * scale
    b = jax.random.normal(kb, (G,), jnp.float32) * scale

    fwd = jax.jit(one_conv_forward)
    out = fwd(x, w, b)
    jax.block_until_ready(out)

    # Pure-JAX f32 reference for correctness.
    conv = lax.conv_general_dilated(
        x, w, window_strides=(1, 1), padding=((1, 1), (1, 1)),
        dimension_numbers=("NCHW", "OIHW", "NCHW"))
    y_ref = conv + b[None, :, None, None]
    y_ref = jnp.where(y_ref >= 0.0, y_ref, 0.1 * y_ref)
    ref = jnp.concatenate([x, y_ref], axis=1)

    assert out.shape == (B, G0 + G, H, W)
    assert bool(jnp.isfinite(out).all())
    # Passthrough channels are exact; conv channels differ only by bf16
    # operand rounding (f32 accumulation), so a loose tolerance suffices.
    max_err = float(jnp.max(jnp.abs(out - ref)))
    assert max_err < 5e-2, f"max abs error vs reference: {max_err}"
    print("KERNEL_OK")
</pallas_src>

<mosaic_0001>
module attributes {stable_mosaic.version = 11 : i64} {
  func.func @_one_conv_kernel(%arg0: i32, %arg1: memref<1x64x256xf32, #tpu.memory_space<vmem>>, %arg2: memref<32x576xbf16, #tpu.memory_space<vmem>>, %arg3: memref<32x1xf32, #tpu.memory_space<vmem>>, %arg4: memref<9x1x256xf32, #tpu.memory_space<vmem>>, %arg5: memref<1x96x256xf32, #tpu.memory_space<vmem>>, %arg6: memref<576x256xbf16, #tpu.memory_space<vmem>>) attributes {dimension_semantics = [#tpu.dimension_semantics<parallel>], iteration_bounds = array<i64: 2>, scalar_prefetch = 0 : i64, scratch_operands = 1 : i64, tpu.core_type = #tpu.core_type<tc>, window_params = [{transform_indices = @transform_0, window_bounds = array<i64: 1, 64, 256>}, {pipeline_mode = #tpu.pipeline_mode<synchronous>, transform_indices = @transform_1, window_bounds = array<i64: 32, 576>}, {pipeline_mode = #tpu.pipeline_mode<synchronous>, transform_indices = @transform_2, window_bounds = array<i64: 32, 1>}, {pipeline_mode = #tpu.pipeline_mode<synchronous>, transform_indices = @transform_3, window_bounds = array<i64: 9, 1, 256>}, {transform_indices = @transform_4, window_bounds = array<i64: 1, 96, 256>}]} {
    %c0 = arith.constant 0 : index
    %c0_0 = arith.constant 0 : index
    %0 = vector.load %arg2[%c0, %c0_0] : memref<32x576xbf16, #tpu.memory_space<vmem>>, vector<32x576xbf16>
    %c0_1 = arith.constant 0 : index
    %c0_2 = arith.constant 0 : index
    %1 = vector.load %arg3[%c0_1, %c0_2] : memref<32x1xf32, #tpu.memory_space<vmem>>, vector<32x1xf32>
    %c0_3 = arith.constant 0 : index
    %c0_4 = arith.constant 0 : index
    %c0_5 = arith.constant 0 : index
    %2 = vector.load %arg1[%c0_3, %c0_4, %c0_5] : memref<1x64x256xf32, #tpu.memory_space<vmem>>, vector<1x64x256xf32>
    %3 = vector.shape_cast %2 : vector<1x64x256xf32> to vector<64x256xf32>
    %c0_6 = arith.constant 0 : index
    %c0_7 = arith.constant 0 : index
    %c0_8 = arith.constant 0 : index
    %4 = vector.load %arg5[%c0_6, %c0_7, %c0_8] : memref<1x96x256xf32, #tpu.memory_space<vmem>>, vector<1x64x256xf32>
    %5 = vector.shape_cast %4 : vector<1x64x256xf32> to vector<64x256xf32>
    %6 = vector.shape_cast %3 : vector<64x256xf32> to vector<1x64x256xf32>
    tpu.vector_store %arg5[%c0_6, %c0_7, %c0_8], %6 {strides = array<i32>} : memref<1x96x256xf32, #tpu.memory_space<vmem>>, vector<1x64x256xf32>,
    %7 = vector.extract_strided_slice %3 {offsets = [0, 239], sizes = [64, 17], strides = [1, 1]} : vector<64x256xf32> to vector<64x17xf32>
    %8 = vector.extract_strided_slice %3 {offsets = [0, 0], sizes = [64, 239], strides = [1, 1]} : vector<64x256xf32> to vector<64x239xf32>
    %9 = tpu.concatenate %7, %8 in 1 : vector<64x17xf32>, vector<64x239xf32> -> vector<64x256xf32>
    %c0_9 = arith.constant 0 : index
    %c0_10 = arith.constant 0 : index
    %c0_11 = arith.constant 0 : index
    %10 = vector.load %arg4[%c0_9, %c0_10, %c0_11] : memref<9x1x256xf32, #tpu.memory_space<vmem>>, vector<1x1x256xf32>
    %11 = vector.shape_cast %10 : vector<1x1x256xf32> to vector<1x256xf32>
    %12 = vector.broadcast %11 : vector<1x256xf32> to vector<64x256xf32>
    %13 = arith.mulf %9, %12 : vector<64x256xf32>
    %14 = arith.truncf %13 : vector<64x256xf32> to vector<64x256xbf16>
    %c0_12 = arith.constant 0 : index
    %c0_13 = arith.constant 0 : index
    %15 = vector.load %arg6[%c0_12, %c0_13] : memref<576x256xbf16, #tpu.memory_space<vmem>>, vector<64x256xbf16>
    tpu.vector_store %arg6[%c0_12, %c0_13], %14 {strides = array<i32>} : memref<576x256xbf16, #tpu.memory_space<vmem>>, vector<64x256xbf16>,
    %16 = vector.extract_strided_slice %3 {offsets = [0, 240], sizes = [64, 16], strides = [1, 1]} : vector<64x256xf32> to vector<64x16xf32>
    %17 = vector.extract_strided_slice %3 {offsets = [0, 0], sizes = [64, 240], strides = [1, 1]} : vector<64x256xf32> to vector<64x240xf32>
    %18 = tpu.concatenate %16, %17 in 1 : vector<64x16xf32>, vector<64x240xf32> -> vector<64x256xf32>
    %c1 = arith.constant 1 : index
    %c0_14 = arith.constant 0 : index
    %c0_15 = arith.constant 0 : index
    %19 = vector.load %arg4[%c1, %c0_14, %c0_15] : memref<9x1x256xf32, #tpu.memory_space<vmem>>, vector<1x1x256xf32>
    %20 = vector.shape_cast %19 : vector<1x1x256xf32> to vector<1x256xf32>
    %21 = vector.broadcast %20 : vector<1x256xf32> to vector<64x256xf32>
    %22 = arith.mulf %18, %21 : vector<64x256xf32>
    %23 = arith.truncf %22 : vector<64x256xf32> to vector<64x256xbf16>
    %c64 = arith.constant 64 : index
    %c0_16 = arith.constant 0 : index
    %24 = vector.load %arg6[%c64, %c0_16] : memref<576x256xbf16, #tpu.memory_space<vmem>>, vector<64x256xbf16>
    tpu.vector_store %arg6[%c64, %c0_16], %23 {strides = array<i32>} : memref<576x256xbf16, #tpu.memory_space<vmem>>, vector<64x256xbf16>,
    %25 = vector.extract_strided_slice %3 {offsets = [0, 241], sizes = [64, 15], strides = [1, 1]} : vector<64x256xf32> to vector<64x15xf32>
    %26 = vector.extract_strided_slice %3 {offsets = [0, 0], sizes = [64, 241], strides = [1, 1]} : vector<64x256xf32> to vector<64x241xf32>
    %27 = tpu.concatenate %25, %26 in 1 : vector<64x15xf32>, vector<64x241xf32> -> vector<64x256xf32>
    %c2 = arith.constant 2 : index
    %c0_17 = arith.constant 0 : index
    %c0_18 = arith.constant 0 : index
    %28 = vector.load %arg4[%c2, %c0_17, %c0_18] : memref<9x1x256xf32, #tpu.memory_space<vmem>>, vector<1x1x256xf32>
    %29 = vector.shape_cast %28 : vector<1x1x256xf32> to vector<1x256xf32>
    %30 = vector.broadcast %29 : vector<1x256xf32> to vector<64x256xf32>
    %31 = arith.mulf %27, %30 : vector<64x256xf32>
    %32 = arith.truncf %31 : vector<64x256xf32> to vector<64x256xbf16>
    %c128 = arith.constant 128 : index
    %c0_19 = arith.constant 0 : index
    %33 = vector.load %arg6[%c128, %c0_19] : memref<576x256xbf16, #tpu.memory_space<vmem>>, vector<64x256xbf16>
    tpu.vector_store %arg6[%c128, %c0_19], %32 {strides = array<i32>} : memref<576x256xbf16, #tpu.memory_space<vmem>>, vector<64x256xbf16>,
    %34 = vector.extract_strided_slice %3 {offsets = [0, 255], sizes = [64, 1], strides = [1, 1]} : vector<64x256xf32> to vector<64x1xf32>
    %35 = vector.extract_strided_slice %3 {offsets = [0, 0], sizes = [64, 255], strides = [1, 1]} : vector<64x256xf32> to vector<64x255xf32>
    %36 = tpu.concatenate %34, %35 in 1 : vector<64x1xf32>, vector<64x255xf32> -> vector<64x256xf32>
    %c3 = arith.constant 3 : index
    %c0_20 = arith.constant 0 : index
    %c0_21 = arith.constant 0 : index
    %37 = vector.load %arg4[%c3, %c0_20, %c0_21] : memref<9x1x256xf32, #tpu.memory_space<vmem>>, vector<1x1x256xf32>
    %38 = vector.shape_cast %37 : vector<1x1x256xf32> to vector<1x256xf32>
    %39 = vector.broadcast %38 : vector<1x256xf32> to vector<64x256xf32>
    %40 = arith.mulf %36, %39 : vector<64x256xf32>
    %41 = arith.truncf %40 : vector<64x256xf32> to vector<64x256xbf16>
    %c192 = arith.constant 192 : index
    %c0_22 = arith.constant 0 : index
    %42 = vector.load %arg6[%c192, %c0_22] : memref<576x256xbf16, #tpu.memory_space<vmem>>, vector<64x256xbf16>
    tpu.vector_store %arg6[%c192, %c0_22], %41 {strides = array<i32>} : memref<576x256xbf16, #tpu.memory_space<vmem>>, vector<64x256xbf16>,
    %c4 = arith.constant 4 : index
    %c0_23 = arith.constant 0 : index
    %c0_24 = arith.constant 0 : index
    %43 = vector.load %arg4[%c4, %c0_23, %c0_24] : memref<9x1x256xf32, #tpu.memory_space<vmem>>, vector<1x1x256xf32>
    %44 = vector.shape_cast %43 : vector<1x1x256xf32> to vector<1x256xf32>
    %45 = vector.broadcast %44 : vector<1x256xf32> to vector<64x256xf32>
    %46 = arith.mulf %3, %45 : vector<64x256xf32>
    %47 = arith.truncf %46 : vector<64x256xf32> to vector<64x256xbf16>
    %c256 = arith.constant 256 : index
    %c0_25 = arith.constant 0 : index
    %48 = vector.load %arg6[%c256, %c0_25] : memref<576x256xbf16, #tpu.memory_space<vmem>>, vector<64x256xbf16>
    tpu.vector_store %arg6[%c256, %c0_25], %47 {strides = array<i32>} : memref<576x256xbf16, #tpu.memory_space<vmem>>, vector<64x256xbf16>,
    %49 = vector.extract_strided_slice %3 {offsets = [0, 1], sizes = [64, 255], strides = [1, 1]} : vector<64x256xf32> to vector<64x255xf32>
    %50 = vector.extract_strided_slice %3 {offsets = [0, 0], sizes = [64, 1], strides = [1, 1]} : vector<64x256xf32> to vector<64x1xf32>
    %51 = tpu.concatenate %49, %50 in 1 : vector<64x255xf32>, vector<64x1xf32> -> vector<64x256xf32>
    %c5 = arith.constant 5 : index
    %c0_26 = arith.constant 0 : index
    %c0_27 = arith.constant 0 : index
    %52 = vector.load %arg4[%c5, %c0_26, %c0_27] : memref<9x1x256xf32, #tpu.memory_space<vmem>>, vector<1x1x256xf32>
    %53 = vector.shape_cast %52 : vector<1x1x256xf32> to vector<1x256xf32>
    %54 = vector.broadcast %53 : vector<1x256xf32> to vector<64x256xf32>
    %55 = arith.mulf %51, %54 : vector<64x256xf32>
    %56 = arith.truncf %55 : vector<64x256xf32> to vector<64x256xbf16>
    %c320 = arith.constant 320 : index
    %c0_28 = arith.constant 0 : index
    %57 = vector.load %arg6[%c320, %c0_28] : memref<576x256xbf16, #tpu.memory_space<vmem>>, vector<64x256xbf16>
    tpu.vector_store %arg6[%c320, %c0_28], %56 {strides = array<i32>} : memref<576x256xbf16, #tpu.memory_space<vmem>>, vector<64x256xbf16>,
    %58 = vector.extract_strided_slice %3 {offsets = [0, 15], sizes = [64, 241], strides = [1, 1]} : vector<64x256xf32> to vector<64x241xf32>
    %59 = vector.extract_strided_slice %3 {offsets = [0, 0], sizes = [64, 15], strides = [1, 1]} : vector<64x256xf32> to vector<64x15xf32>
    %60 = tpu.concatenate %58, %59 in 1 : vector<64x241xf32>, vector<64x15xf32> -> vector<64x256xf32>
    %c6 = arith.constant 6 : index
    %c0_29 = arith.constant 0 : index
    %c0_30 = arith.constant 0 : index
    %61 = vector.load %arg4[%c6, %c0_29, %c0_30] : memref<9x1x256xf32, #tpu.memory_space<vmem>>, vector<1x1x256xf32>
    %62 = vector.shape_cast %61 : vector<1x1x256xf32> to vector<1x256xf32>
    %63 = vector.broadcast %62 : vector<1x256xf32> to vector<64x256xf32>
    %64 = arith.mulf %60, %63 : vector<64x256xf32>
    %65 = arith.truncf %64 : vector<64x256xf32> to vector<64x256xbf16>
    %c384 = arith.constant 384 : index
    %c0_31 = arith.constant 0 : index
    %66 = vector.load %arg6[%c384, %c0_31] : memref<576x256xbf16, #tpu.memory_space<vmem>>, vector<64x256xbf16>
    tpu.vector_store %arg6[%c384, %c0_31], %65 {strides = array<i32>} : memref<576x256xbf16, #tpu.memory_space<vmem>>, vector<64x256xbf16>,
    %67 = vector.extract_strided_slice %3 {offsets = [0, 16], sizes = [64, 240], strides = [1, 1]} : vector<64x256xf32> to vector<64x240xf32>
    %68 = vector.extract_strided_slice %3 {offsets = [0, 0], sizes = [64, 16], strides = [1, 1]} : vector<64x256xf32> to vector<64x16xf32>
    %69 = tpu.concatenate %67, %68 in 1 : vector<64x240xf32>, vector<64x16xf32> -> vector<64x256xf32>
    %c7 = arith.constant 7 : index
    %c0_32 = arith.constant 0 : index
    %c0_33 = arith.constant 0 : index
    %70 = vector.load %arg4[%c7, %c0_32, %c0_33] : memref<9x1x256xf32, #tpu.memory_space<vmem>>, vector<1x1x256xf32>
    %71 = vector.shape_cast %70 : vector<1x1x256xf32> to vector<1x256xf32>
    %72 = vector.broadcast %71 : vector<1x256xf32> to vector<64x256xf32>
    %73 = arith.mulf %69, %72 : vector<64x256xf32>
    %74 = arith.truncf %73 : vector<64x256xf32> to vector<64x256xbf16>
    %c448 = arith.constant 448 : index
    %c0_34 = arith.constant 0 : index
    %75 = vector.load %arg6[%c448, %c0_34] : memref<576x256xbf16, #tpu.memory_space<vmem>>, vector<64x256xbf16>
    tpu.vector_store %arg6[%c448, %c0_34], %74 {strides = array<i32>} : memref<576x256xbf16, #tpu.memory_space<vmem>>, vector<64x256xbf16>,
    %76 = vector.extract_strided_slice %3 {offsets = [0, 17], sizes = [64, 239], strides = [1, 1]} : vector<64x256xf32> to vector<64x239xf32>
    %77 = vector.extract_strided_slice %3 {offsets = [0, 0], sizes = [64, 17], strides = [1, 1]} : vector<64x256xf32> to vector<64x17xf32>
    %78 = tpu.concatenate %76, %77 in 1 : vector<64x239xf32>, vector<64x17xf32> -> vector<64x256xf32>
    %c8 = arith.constant 8 : index
    %c0_35 = arith.constant 0 : index
    %c0_36 = arith.constant 0 : index
    %79 = vector.load %arg4[%c8, %c0_35, %c0_36] : memref<9x1x256xf32, #tpu.memory_space<vmem>>, vector<1x1x256xf32>
    %80 = vector.shape_cast %79 : vector<1x1x256xf32> to vector<1x256xf32>
    %81 = vector.broadcast %80 : vector<1x256xf32> to vector<64x256xf32>
    %82 = arith.mulf %78, %81 : vector<64x256xf32>
    %83 = arith.truncf %82 : vector<64x256xf32> to vector<64x256xbf16>
    %c512 = arith.constant 512 : index
    %c0_37 = arith.constant 0 : index
    %84 = vector.load %arg6[%c512, %c0_37] : memref<576x256xbf16, #tpu.memory_space<vmem>>, vector<64x256xbf16>
    tpu.vector_store %arg6[%c512, %c0_37], %83 {strides = array<i32>} : memref<576x256xbf16, #tpu.memory_space<vmem>>, vector<64x256xbf16>,
    %c0_38 = arith.constant 0 : index
    %c0_39 = arith.constant 0 : index
    %85 = vector.load %arg6[%c0_38, %c0_39] : memref<576x256xbf16, #tpu.memory_space<vmem>>, vector<576x256xbf16>
    %cst = arith.constant dense<0.000000e+00> : vector<32x256xf32>
    %86 = tpu.matmul %0, %85, %cst {dimension_numbers = #tpu.dot_dimension_numbers<[1], [0], [0], [1], [0, 0, 1, 1], [], []>} : vector<32x576xbf16>, vector<576x256xbf16>, vector<32x256xf32> -> vector<32x256xf32>
    %87 = vector.broadcast %1 : vector<32x1xf32> to vector<32x256xf32>
    %88 = arith.addf %86, %87 : vector<32x256xf32>
    %cst_40 = arith.constant 0.000000e+00 : f32
    %89 = vector.broadcast %cst_40 : f32 to vector<32x256xf32>
    %90 = arith.cmpf oge, %88, %89 : vector<32x256xf32>
    %cst_41 = arith.constant 1.000000e-01 : f32
    %91 = vector.broadcast %cst_41 : f32 to vector<32x256xf32>
    %92 = arith.mulf %91, %88 : vector<32x256xf32>
    %93 = arith.select %90, %88, %92 : vector<32x256xi1>, vector<32x256xf32>
    %c0_42 = arith.constant 0 : index
    %c64_43 = arith.constant 64 : index
    %c0_44 = arith.constant 0 : index
    %94 = vector.load %arg5[%c0_42, %c64_43, %c0_44] : memref<1x96x256xf32, #tpu.memory_space<vmem>>, vector<1x32x256xf32>
    %95 = vector.shape_cast %94 : vector<1x32x256xf32> to vector<32x256xf32>
    %96 = vector.shape_cast %93 : vector<32x256xf32> to vector<1x32x256xf32>
    tpu.vector_store %arg5[%c0_42, %c64_43, %c0_44], %96 {strides = array<i32>} : memref<1x96x256xf32, #tpu.memory_space<vmem>>, vector<1x32x256xf32>,
    return
  }
  func.func @transform_0(%arg0: i32) -> (i32, i32, i32) {
    %c0_i32 = arith.constant 0 : i32
    %c0_i32_0 = arith.constant 0 : i32
    %c0_i32_1 = arith.constant 0 : i32
    return %arg0, %c0_i32, %c0_i32_0 : i32, i32, i32
  }
  func.func @transform_1(%arg0: i32) -> (i32, i32) {
    %c0_i32 = arith.constant 0 : i32
    %c0_i32_0 = arith.constant 0 : i32
    %c0_i32_1 = arith.constant 0 : i32
    return %c0_i32, %c0_i32_0 : i32, i32
  }
  func.func @transform_2(%arg0: i32) -> (i32, i32) {
    %c0_i32 = arith.constant 0 : i32
    %c0_i32_0 = arith.constant 0 : i32
    %c0_i32_1 = arith.constant 0 : i32
    return %c0_i32, %c0_i32_0 : i32, i32
  }
  func.func @transform_3(%arg0: i32) -> (i32, i32, i32) {
    %c0_i32 = arith.constant 0 : i32
    %c0_i32_0 = arith.constant 0 : i32
    %c0_i32_1 = arith.constant 0 : i32
    %c0_i32_2 = arith.constant 0 : i32
    return %c0_i32, %c0_i32_0, %c0_i32_1 : i32, i32, i32
  }
  func.func @transform_4(%arg0: i32) -> (i32, i32, i32) {
    %c0_i32 = arith.constant 0 : i32
    %c0_i32_0 = arith.constant 0 : i32
    %c0_i32_1 = arith.constant 0 : i32
    return %arg0, %c0_i32, %c0_i32_0 : i32, i32, i32
  }
}

</mosaic_0001>

<bundles_post_ra>
// kernel: one_conv_forward.1
= control target key start
LH: loop header
LB: loop body
LE: loop exit
PB: predicated region body
PF: predicated region fallthrough
CT: control target
= control target key end

     0   :  { %s1785_s15 = smov 0   ;;  %s2533_s0 = inlined_call_operand.vmem [shape: f32[2,64,256], index: 0, kind: input, shape index: {}]   ;;  %s2534_s1 = inlined_call_operand.vmem [shape: bf16[32,576], index: 1, kind: input, shape index: {}]   ;;  %s2535_s2 = inlined_call_operand.vmem [shape: f32[32,1], index: 2, kind: input, shape index: {}]   ;;  %s2536_s3 = inlined_call_operand.vmem [shape: f32[9,1,256], index: 3, kind: input, shape index: {}]   ;;  %s2537_s4 = inlined_call_operand.vmem [shape: f32[2,96,256], index: 4, kind: output, shape index: {}]  }
   0x1 LB: > { %s1646_s16 = sadd.s32 4294967295, %s1749_s15   ;;  %p1650_p0 = scmp.ge.s32.totalorder %s1749_s15, 1  ;;  %s1749_s15 = sphi %s1785_s15, %s14_s15  }
   0x2   : > { %p162_p1 = scmp.lt.s32.totalorder %s1749_s15, 3 }
   0x4   : > { %p163_p2 = pnand %p1650_p0, %p162_p1 }
   0x5   : > { %p188_p3 = scmp.lt.s32.totalorder (!%p163_p2), %s1646_s16, 1  ;;  %s1751_s25 = smov (!%p163_p2), 17   ;;  %v338_v16 = vlaneseq (!%p163_p2)  ;;  %v1657_v20 = vld [vmem:[%s2536_s3 + $0x8] sm:$0x3] (!%p163_p2)  ;;  %v336_v47 = vld [vmem:[%s2536_s3] sm:$0x3] (!%p163_p2) }
   0x6   : > { %166 = sbr.rel (%p163_p2) target bundleno = 620 (0x26c), region = 36  ;;  %s1752_s28 = smov (!%p163_p2), 16   ;;  %vm303_vm0 = vcmask (!%p163_p2), 138240   ;;  %vm420_vm1 = vcmask (!%p163_p2), 130048   ;;  %vm811_vm2 = vcmask (!%p163_p2), 1039360   ;;  %vm538_vm3 = vcmask (!%p163_p2), 121856  }
   0x7   : > { %v339_v17 = vshrl.u32 (!%p163_p2), %v338_v16, 7  ;;  %s1753_s29 = smov (!%p163_p2), 127   ;;  %s1754_s30 = smov (!%p163_p2), 15   ;;  %vm929_vm4 = vcmask (!%p163_p2), 924672   ;;  %vm656_vm5 = vcmask (!%p163_p2), 7168   ;;  %vm1047_vm6 = vcmask (!%p163_p2), 916480  }
   0x8   : > { %s1755_s5 = smov (!%p163_p2), 113   ;;  %s1756_s12 = smov (!%p163_p2), 1   ;;  %vm1165_vm7 = vcmask (!%p163_p2), 908288   ;;  %vm1393_vm8 = vcmask (!%p163_p2), 523264  }
   0x9   : > { %v1899_v18 = vsub.s32 (!%p163_p2), 1, %v339_v17  ;;  %v1901_v19 = vsub.s32 (!%p163_p2), 0, %v339_v17  ;;  %s1757_s13 = smov (!%p163_p2), 112   ;;  %s1758_s23 = smov (!%p163_p2), 111  }
   0xb   : > { %v744_v21 = vrot.slane (!%p163_p2), %v1657_v20, %v1899_v18  ;;  %v740_v22 = vrot.slane (!%p163_p2), %v1657_v20, %v1901_v19  ;;  %v2012_v50 = vrot.slane (!%p163_p2), %v336_v47, %v1899_v18  ;;  %v2020_v52 = vrot.slane (!%p163_p2), %v336_v47, %v1901_v19 }
   0xd   : > { %s2539_s16 = smov (!%p188_p3, %s1646_s16), 1 }
   0xe   : > { %s1676_s17 = sshll.u32 %s2539_s16, 7  ;;  %s1709_s18 = smul.u32 192, %s2539_s16 }
   0xf   : > { %s1796_s21 = scalar_lea.vmem %s2533_s0, %s1676_s17 }
  0x10   : > { %s1801_s24 = scalar_lea.vmem %s2537_s4, %s1709_s18  ;;  %v1804_v0 = vld [vmem:[%s1796_s21 + $0x8] sm:$0xff]  ;;  %v1807_v1 = vld [vmem:[%s1796_s21] sm:$0xff]  ;;  %v1810_v2 = vld [vmem:[%s1796_s21 + $0x18] sm:$0xff] }
  0x11   : > { %255 = vrot.lane.b32.xlu0 %v1804_v0, %s1751_s25  ;;  %232 = vst [vmem:[%s1801_s24 + $0x8] sm:$0xff] %v1804_v0  ;;  %287 = vrot.lane.b32.xlu1 %v1807_v1, %s1751_s25  ;;  %231 = vst [vmem:[%s1801_s24] sm:$0xff] %v1807_v1  ;;  %v748_v23 = vmul.f32 %v744_v21, %v1804_v0  ;;  %v750_v24 = vmul.f32 %v744_v21, %v1810_v2 }
  0x12   : > { %234 = vst [vmem:[%s1801_s24 + $0x18] sm:$0xff] %v1810_v2  ;;  %v1823_v3 = vld [vmem:[%s1796_s21 + $0x10] sm:$0xff]  ;;  %v1826_v4 = vld [vmem:[%s1796_s21 + $0x28] sm:$0xff]  ;;  %v1833_v5 = vld [vmem:[%s1796_s21 + $0x38] sm:$0xff]  ;;  %v747_v25 = vmul.f32 %v740_v22, %v1807_v1 }
  0x13   : > { %233 = vst [vmem:[%s1801_s24 + $0x10] sm:$0xff] %v1823_v3  ;;  %236 = vst [vmem:[%s1801_s24 + $0x28] sm:$0xff] %v1826_v4  ;;  %v1836_v6 = vld [vmem:[%s1796_s21 + $0x20] sm:$0xff]  ;;  %v1839_v7 = vld [vmem:[%s1796_s21 + $0x30] sm:$0xff]  ;;  %v749_v26 = vmul.f32 %v740_v22, %v1823_v3  ;;  %v764_v27 = vpack.c.bf16 %v750_v24, %v748_v23  ;;  %v752_v29 = vmul.f32 %v744_v21, %v1826_v4 }
  0x14   : > { %238 = vst [vmem:[%s1801_s24 + $0x38] sm:$0xff] %v1833_v5  ;;  %235 = vst [vmem:[%s1801_s24 + $0x20] sm:$0xff] %v1836_v6  ;;  %v1848_v8 = vld [vmem:[%s1796_s21 + $0x48] sm:$0xff]  ;;  %v1851_v9 = vld [vmem:[%s1796_s21 + $0x58] sm:$0xff]  ;;  %v754_v30 = vmul.f32 %v744_v21, %v1833_v5  ;;  %v751_v31 = vmul.f32 %v740_v22, %v1836_v6  ;;  %v753_v32 = vmul.f32 %v740_v22, %v1839_v7 }
  0x15   : > { %237 = vst [vmem:[%s1801_s24 + $0x30] sm:$0xff] %v1839_v7  ;;  %v1854_v10 = vld [vmem:[%s1796_s21 + $0x40] sm:$0xff]  ;;  %240 = vst [vmem:[%s1801_s24 + $0x48] sm:$0xff] %v1848_v8  ;;  %v1863_v11 = vld [vmem:[%s1796_s21 + $0x50] sm:$0xff]  ;;  %v763_v28 = vpack.c.bf16 %v749_v26, %v747_v25  ;;  %1453 = vmatprep.subr.bf16.mxu0 %v764_v27  ;;  %v756_v35 = vmul.f32 %v744_v21, %v1848_v8  ;;  %v758_v36 = vmul.f32 %v744_v21, %v1851_v9 }
  0x16   : > { %242 = vst [vmem:[%s1801_s24 + $0x58] sm:$0xff] %v1851_v9  ;;  %239 = vst [vmem:[%s1801_s24 + $0x40] sm:$0xff] %v1854_v10  ;;  %v1866_v12 = vld [vmem:[%s1796_s21 + $0x68] sm:$0xff]  ;;  %v1869_v13 = vld [vmem:[%s1796_s21 + $0x78] sm:$0xff]  ;;  %v766_v33 = vpack.c.bf16 %v754_v30, %v752_v29  ;;  %v765_v34 = vpack.c.bf16 %v753_v32, %v751_v31  ;;  %v755_v37 = vmul.f32 %v740_v22, %v1854_v10 }
  0x17   : > { %257 = vrot.lane.b32.xlu0 %v1810_v2, %s1751_s25  ;;  %289 = vrot.lane.b32.xlu1 %v1823_v3, %s1751_s25  ;;  %241 = vst [vmem:[%s1801_s24 + $0x50] sm:$0xff] %v1863_v11  ;;  %244 = vst [vmem:[%s1801_s24 + $0x68] sm:$0xff] %v1866_v12  ;;  %v757_v38 = vmul.f32 %v740_v22, %v1863_v11  ;;  %v768_v39 = vpack.c.bf16 %v758_v36, %v756_v35 }
  0x18   : > { %246 = vst [vmem:[%s1801_s24 + $0x78] sm:$0xff] %v1869_v13  ;;  %v1882_v14 = vld [vmem:[%s1796_s21 + $0x60] sm:$0xff]  ;;  %v1885_v15 = vld [vmem:[%s1796_s21 + $0x70] sm:$0xff]  ;;  %1454 = vmatpush1.bf16.msra.mxu0 %v763_v28  ;;  %v760_v41 = vmul.f32 %v744_v21, %v1866_v12  ;;  %v762_v42 = vmul.f32 %v744_v21, %v1869_v13 }
  0x19   : > { %243 = vst [vmem:[%s1801_s24 + $0x60] sm:$0xff] %v1882_v14  ;;  %245 = vst [vmem:[%s1801_s24 + $0x70] sm:$0xff] %v1885_v15  ;;  %1455 = vmatprep.subr.bf16.mxu0 %v766_v33  ;;  %v767_v40 = vpack.c.bf16 %v757_v38, %v755_v37  ;;  %v759_v43 = vmul.f32 %v740_v22, %v1882_v14  ;;  %v761_v44 = vmul.f32 %v740_v22, %v1885_v15 }
  0x1a   : > { %v770_v45 = vpack.c.bf16 %v762_v42, %v760_v41 }
  0x1b   : > { %259 = vrot.lane.b32.xlu0 %v1826_v4, %s1751_s25  ;;  %261 = vrot.lane.b32.xlu1 %v1833_v5, %s1751_s25  ;;  %v769_v46 = vpack.c.bf16 %v761_v44, %v759_v43 }
  0x1c   : > { %1456 = vmatpush1.bf16.msra.mxu0 %v765_v34 }
  0x1d   : > { %1457 = vmatprep.subr.bf16.mxu0 %v768_v39 }
  0x1f   : > { %291 = vrot.lane.b32.xlu0 %v1836_v6, %s1751_s25  ;;  %293 = vrot.lane.b32.xlu1 %v1839_v7, %s1751_s25 }
  0x20   : > { %1458 = vmatpush1.bf16.msra.mxu0 %v767_v40 }
  0x21   : > { %1459 = vmatprep.subr.bf16.mxu0 %v770_v45 }
  0x23   : > { %263 = vrot.lane.b32.xlu0 %v1848_v8, %s1751_s25  ;;  %265 = vrot.lane.b32.xlu1 %v1851_v9, %s1751_s25 }
  0x24   : > { %1460 = vmatpush1.bf16.msra.mxu0 %v769_v46 }
  0x27   : > { %295 = vrot.lane.b32.xlu0 %v1854_v10, %s1751_s25  ;;  %297 = vrot.lane.b32.xlu1 %v1863_v11, %s1751_s25 }
  0x2b   : > { %267 = vrot.lane.b32.xlu0 %v1866_v12, %s1751_s25  ;;  %269 = vrot.lane.b32.xlu1 %v1869_v13, %s1751_s25 }
  0x2f   : > { %299 = vrot.lane.b32.xlu0 %v1882_v14, %s1751_s25  ;;  %301 = vrot.lane.b32.xlu1 %v1885_v15, %s1751_s25 }
  0x33   : > { %380 = vrot.lane.b32.xlu0 %v1804_v0, %s1752_s28  ;;  %382 = vrot.lane.b32.xlu1 %v1810_v2, %s1752_s28 }
  0x37   : > { %404 = vrot.lane.b32.xlu0 %v1807_v1, %s1752_s28  ;;  %406 = vrot.lane.b32.xlu1 %v1823_v3, %s1752_s28 }
  0x3b   : > { %779 = vrot.lane.b32.xlu0 %v1807_v1, %s1753_s29  ;;  %781 = vrot.lane.b32.xlu1 %v1804_v0, %s1753_s29 }
  0x3f   : > { %783 = vrot.lane.b32.xlu0 %v1823_v3, %s1753_s29  ;;  %785 = vrot.lane.b32.xlu1 %v1810_v2, %s1753_s29 }
  0x43   : > { %384 = vrot.lane.b32.xlu0 %v1826_v4, %s1752_s28  ;;  %386 = vrot.lane.b32.xlu1 %v1833_v5, %s1752_s28 }
  0x47   : > { %408 = vrot.lane.b32.xlu0 %v1836_v6, %s1752_s28  ;;  %410 = vrot.lane.b32.xlu1 %v1839_v7, %s1752_s28 }
  0x4b   : > { %787 = vrot.lane.b32.xlu0 %v1836_v6, %s1753_s29  ;;  %789 = vrot.lane.b32.xlu1 %v1826_v4, %s1753_s29 }
  0x4f   : > { %791 = vrot.lane.b32.xlu0 %v1839_v7, %s1753_s29  ;;  %793 = vrot.lane.b32.xlu1 %v1833_v5, %s1753_s29 }
  0x53   : > { %388 = vrot.lane.b32.xlu0 %v1848_v8, %s1752_s28  ;;  %390 = vrot.lane.b32.xlu1 %v1851_v9, %s1752_s28 }
  0x57   : > { %412 = vrot.lane.b32.xlu0 %v1854_v10, %s1752_s28  ;;  %414 = vrot.lane.b32.xlu1 %v1863_v11, %s1752_s28 }
  0x5b   : > { %795 = vrot.lane.b32.xlu0 %v1854_v10, %s1753_s29  ;;  %797 = vrot.lane.b32.xlu1 %v1848_v8, %s1753_s29 }
  0x5f   : > { %799 = vrot.lane.b32.xlu0 %v1863_v11, %s1753_s29  ;;  %801 = vrot.lane.b32.xlu1 %v1851_v9, %s1753_s29 }
  0x63   : > { %392 = vrot.lane.b32.xlu0 %v1866_v12, %s1752_s28  ;;  %394 = vrot.lane.b32.xlu1 %v1869_v13, %s1752_s28 }
  0x67   : > { %416 = vrot.lane.b32.xlu0 %v1882_v14, %s1752_s28  ;;  %418 = vrot.lane.b32.xlu1 %v1885_v15, %s1752_s28 }
  0x6b   : > { %803 = vrot.lane.b32.xlu0 %v1882_v14, %s1753_s29  ;;  %805 = vrot.lane.b32.xlu1 %v1866_v12, %s1753_s29 }
  0x6f   : > { %807 = vrot.lane.b32.xlu0 %v1885_v15, %s1753_s29  ;;  %809 = vrot.lane.b32.xlu1 %v1869_v13, %s1753_s29 }
  0x73   : > { %498 = vrot.lane.b32.xlu0 %v1804_v0, %s1754_s30  ;;  %500 = vrot.lane.b32.xlu1 %v1810_v2, %s1754_s30 }
  0x77   : > { %522 = vrot.lane.b32.xlu0 %v1807_v1, %s1754_s30  ;;  %524 = vrot.lane.b32.xlu1 %v1823_v3, %s1754_s30 }
  0x7b   : > { %897 = vrot.lane.b32.xlu0 %v1807_v1, %s1755_s5  ;;  %899 = vrot.lane.b32.xlu1 %v1804_v0, %s1755_s5 }
  0x7f   : > { %901 = vrot.lane.b32.xlu0 %v1823_v3, %s1755_s5  ;;  %903 = vrot.lane.b32.xlu1 %v1810_v2, %s1755_s5 }
  0x83   : > { %502 = vrot.lane.b32.xlu0 %v1826_v4, %s1754_s30  ;;  %504 = vrot.lane.b32.xlu1 %v1833_v5, %s1754_s30  ;;  %v256_v48 = vpop.permute.xlu0 %255  ;;  %v288_v49 = vpop.permute.xlu1 %287 }
  0x84   : > { %v304_v51 = vsel %vm303_vm0, %v288_v49, %v256_v48  ;;  %v328_v53 = vsel %vm303_vm0, %v256_v48, %v288_v49 }
  0x85   : > { %v349_v58 = vmul.f32 %v2012_v50, %v304_v51  ;;  %v348_v60 = vmul.f32 %v2020_v52, %v328_v53 }
  0x87   : > { %526 = vrot.lane.b32.xlu0 %v1836_v6, %s1754_s30  ;;  %528 = vrot.lane.b32.xlu1 %v1839_v7, %s1754_s30 }
  0x89   : > { %v258_v54 = vpop.permute.xlu0 %257  ;;  %v290_v55 = vpop.permute.xlu1 %289 }
  0x8a   : > { %v329_v56 = vsel %vm303_vm0, %v258_v54, %v290_v55  ;;  %v305_v57 = vsel %vm303_vm0, %v290_v55, %v258_v54 }
  0x8b   : > { %905 = vrot.lane.b32.xlu0 %v1836_v6, %s1755_s5  ;;  %907 = vrot.lane.b32.xlu1 %v1826_v4, %s1755_s5  ;;  %v351_v59 = vmul.f32 %v2012_v50, %v305_v57  ;;  %v350_v61 = vmul.f32 %v2020_v52, %v329_v56 }
  0x8d   : > { %v260_v62 = vpop.permute.xlu0 %259  ;;  %v262_v63 = vpop.permute.xlu1 %261  ;;  %v365_v16 = vpack.c.bf16 %v351_v59, %v349_v58  ;;  %v364_v17 = vpack.c.bf16 %v350_v61, %v348_v60  ;;  %v1654_v60 = vld [vmem:[%s2536_s3 + $0x2] sm:$0x3] }
  0x8f   : > { %909 = vrot.lane.b32.xlu0 %v1839_v7, %s1755_s5  ;;  %911 = vrot.lane.b32.xlu1 %v1833_v5, %s1755_s5 }
  0x90   : > { %1400 = vmatprep.subr.bf16.mxu1 %v365_v16 }
  0x91   : > { %1401 = vmatpush1.bf16.msra.mxu1 %v364_v17  ;;  %v292_v20 = vpop.permute.xlu0 %291  ;;  %v294_v21 = vpop.permute.xlu1 %293 }
  0x92   : > { %v306_v22 = vsel %vm303_vm0, %v292_v20, %v260_v62  ;;  %v330_v23 = vsel %vm303_vm0, %v260_v62, %v292_v20  ;;  %v307_v24 = vsel %vm303_vm0, %v294_v21, %v262_v63  ;;  %v331_v25 = vsel %vm303_vm0, %v262_v63, %v294_v21 }
  0x93   : > { %v352_v26 = vmul.f32 %v2020_v52, %v330_v23  ;;  %v353_v27 = vmul.f32 %v2012_v50, %v306_v22  ;;  %v354_v28 = vmul.f32 %v2020_v52, %v331_v25  ;;  %v355_v29 = vmul.f32 %v2012_v50, %v307_v24  ;;  %506 = vrot.lane.b32.xlu0 %v1848_v8, %s1754_s30 }
  0x94   : > { %508 = vrot.lane.b32.xlu1 %v1851_v9, %s1754_s30 }
  0x95   : > { %v264_v30 = vpop.permute.xlu0 %263  ;;  %v266_v31 = vpop.permute.xlu1 %265  ;;  %v367_v32 = vpack.c.bf16 %v355_v29, %v353_v27  ;;  %v366_v33 = vpack.c.bf16 %v354_v28, %v352_v26  ;;  %v1658_v29 = vld [vmem:[%s2536_s3 + $0xa] sm:$0x3] }
  0x97   : > { %530 = vrot.lane.b32.xlu0 %v1854_v10, %s1754_s30  ;;  %1402 = vmatprep.subr.bf16.mxu1 %v367_v32 }
  0x98   : > { %532 = vrot.lane.b32.xlu1 %v1863_v11, %s1754_s30  ;;  %1403 = vmatpush1.bf16.msra.mxu1 %v366_v33 }
  0x99   : > { %v296_v34 = vpop.permute.xlu0 %295  ;;  %v298_v35 = vpop.permute.xlu1 %297 }
  0x9a   : > { %v308_v36 = vsel %vm303_vm0, %v296_v34, %v264_v30  ;;  %v332_v37 = vsel %vm303_vm0, %v264_v30, %v296_v34  ;;  %v309_v38 = vsel %vm303_vm0, %v298_v35, %v266_v31  ;;  %v333_v39 = vsel %vm303_vm0, %v266_v31, %v298_v35 }
  0x9b   : > { %v356_v40 = vmul.f32 %v2020_v52, %v332_v37  ;;  %v357_v41 = vmul.f32 %v2012_v50, %v308_v36  ;;  %v358_v42 = vmul.f32 %v2020_v52, %v333_v39  ;;  %v359_v43 = vmul.f32 %v2012_v50, %v309_v38  ;;  %913 = vrot.lane.b32.xlu0 %v1854_v10, %s1755_s5 }
  0x9c   : > { %915 = vrot.lane.b32.xlu1 %v1848_v8, %s1755_s5  ;;  %v2110_v34 = vrot.slane %v1658_v29, %v1901_v19  ;;  %v2113_v35 = vrot.slane %v1658_v29, %v1899_v18 }
  0x9d   : > { %v268_v44 = vpop.permute.xlu0 %267  ;;  %v270_v45 = vpop.permute.xlu1 %269  ;;  %v369_v46 = vpack.c.bf16 %v359_v43, %v357_v41  ;;  %v368_v47 = vpack.c.bf16 %v358_v42, %v356_v40 }
  0x9f   : > { %917 = vrot.lane.b32.xlu0 %v1863_v11, %s1755_s5  ;;  %1404 = vmatprep.subr.bf16.mxu1 %v369_v46 }
  0xa0   : > { %919 = vrot.lane.b32.xlu1 %v1851_v9, %s1755_s5  ;;  %1405 = vmatpush1.bf16.msra.mxu1 %v368_v47 }
  0xa1   : > { %v300_v48 = vpop.permute.xlu0 %299  ;;  %v302_v49 = vpop.permute.xlu1 %301 }
  0xa2   : > { %v310_v51 = vsel %vm303_vm0, %v300_v48, %v268_v44  ;;  %v334_v53 = vsel %vm303_vm0, %v268_v44, %v300_v48  ;;  %v311_v54 = vsel %vm303_vm0, %v302_v49, %v270_v45  ;;  %v335_v55 = vsel %vm303_vm0, %v270_v45, %v302_v49 }
  0xa3   : > { %v360_v56 = vmul.f32 %v2020_v52, %v334_v53  ;;  %v361_v57 = vmul.f32 %v2012_v50, %v310_v51  ;;  %v362_v58 = vmul.f32 %v2020_v52, %v335_v55  ;;  %v363_v59 = vmul.f32 %v2012_v50, %v311_v54  ;;  %510 = vrot.lane.b32.xlu0 %v1866_v12, %s1754_s30 }
  0xa4   : > { %512 = vrot.lane.b32.xlu1 %v1869_v13, %s1754_s30  ;;  %v2087_v50 = vrot.slane %v1654_v60, %v1901_v19  ;;  %v2090_v52 = vrot.slane %v1654_v60, %v1899_v18 }
  0xa5   : > { %v381_v61 = vpop.permute.xlu0 %380  ;;  %v383_v62 = vpop.permute.xlu1 %382  ;;  %v371_v63 = vpack.c.bf16 %v363_v59, %v361_v57  ;;  %v370_v16 = vpack.c.bf16 %v362_v58, %v360_v56 }
  0xa7   : > { %534 = vrot.lane.b32.xlu0 %v1882_v14, %s1754_s30  ;;  %1406 = vmatprep.subr.bf16.mxu1 %v371_v63 }
  0xa8   : > { %536 = vrot.lane.b32.xlu1 %v1885_v15, %s1754_s30  ;;  %1407 = vmatpush1.bf16.msra.mxu1 %v370_v16 }
  0xa9   : > { %v405_v17 = vpop.permute.xlu0 %404  ;;  %v407_v20 = vpop.permute.xlu1 %406 }
  0xaa   : > { %v421_v21 = vsel %vm420_vm1, %v405_v17, %v381_v61  ;;  %v445_v22 = vsel %vm420_vm1, %v381_v61, %v405_v17  ;;  %v422_v23 = vsel %vm420_vm1, %v407_v20, %v383_v62  ;;  %v446_v24 = vsel %vm420_vm1, %v383_v62, %v407_v20 }
  0xab   : > { %v466_v25 = vmul.f32 %v2087_v50, %v445_v22  ;;  %v467_v26 = vmul.f32 %v2090_v52, %v421_v21  ;;  %v468_v27 = vmul.f32 %v2087_v50, %v446_v24  ;;  %v469_v28 = vmul.f32 %v2090_v52, %v422_v23  ;;  %921 = vrot.lane.b32.xlu0 %v1882_v14, %s1755_s5 }
  0xac   : > { %923 = vrot.lane.b32.xlu1 %v1866_v12, %s1755_s5 }
  0xad   : > { %v780_v30 = vpop.permute.xlu0 %779  ;;  %v782_v31 = vpop.permute.xlu1 %781  ;;  %v483_v32 = vpack.c.bf16 %v469_v28, %v467_v26  ;;  %v482_v33 = vpack.c.bf16 %v468_v27, %v466_v25 }
  0xae   : > { %v812_v36 = vsel %vm811_vm2, %v780_v30, %v782_v31  ;;  %v844_v37 = vsel %vm811_vm2, %v782_v31, %v780_v30 }
  0xaf   : > { %925 = vrot.lane.b32.xlu0 %v1885_v15, %s1755_s5  ;;  %1408 = vmatprep.subr.bf16.mxu1 %v483_v32  ;;  %v865_v42 = vmul.f32 %v2110_v34, %v812_v36  ;;  %v866_v43 = vmul.f32 %v2113_v35, %v844_v37 }
  0xb0   : > { %927 = vrot.lane.b32.xlu1 %v1869_v13, %s1755_s5  ;;  %1409 = vmatpush1.bf16.msra.mxu1 %v482_v33 }
  0xb1   : > { %v784_v38 = vpop.permute.xlu0 %783  ;;  %v786_v39 = vpop.permute.xlu1 %785 }
  0xb2   : > { %v813_v40 = vsel %vm811_vm2, %v784_v38, %v786_v39  ;;  %v845_v41 = vsel %vm811_vm2, %v786_v39, %v784_v38 }
  0xb3   : > { %v867_v44 = vmul.f32 %v2110_v34, %v813_v40  ;;  %v868_v45 = vmul.f32 %v2113_v35, %v845_v41  ;;  %616 = vrot.lane.b32.xlu0 %v1804_v0, %s1756_s12 }
  0xb4   : > { %618 = vrot.lane.b32.xlu1 %v1810_v2, %s1756_s12 }
  0xb5   : > { %v385_v46 = vpop.permute.xlu0 %384  ;;  %v387_v47 = vpop.permute.xlu1 %386  ;;  %v882_v48 = vpack.c.bf16 %v868_v45, %v866_v43  ;;  %v881_v49 = vpack.c.bf16 %v867_v44, %v865_v42 }
  0xb7   : > { %640 = vrot.lane.b32.xlu0 %v1807_v1, %s1756_s12  ;;  %1461 = vmatprep.subr.bf16.mxu0 %v882_v48 }
  0xb8   : > { %642 = vrot.lane.b32.xlu1 %v1823_v3, %s1756_s12  ;;  %1462 = vmatpush1.bf16.msra.mxu0 %v881_v49 }
  0xb9   : > { %v409_v51 = vpop.permute.xlu0 %408  ;;  %v411_v53 = vpop.permute.xlu1 %410 }
  0xba   : > { %v423_v54 = vsel %vm420_vm1, %v409_v51, %v385_v46  ;;  %v447_v55 = vsel %vm420_vm1, %v385_v46, %v409_v51  ;;  %v424_v56 = vsel %vm420_vm1, %v411_v53, %v387_v47  ;;  %v448_v57 = vsel %vm420_vm1, %v387_v47, %v411_v53 }
  0xbb   : > { %v470_v58 = vmul.f32 %v2087_v50, %v447_v55  ;;  %v471_v59 = vmul.f32 %v2090_v52, %v423_v54  ;;  %v472_v60 = vmul.f32 %v2087_v50, %v448_v57  ;;  %v473_v61 = vmul.f32 %v2090_v52, %v424_v56  ;;  %1015 = vrot.lane.b32.xlu0 %v1807_v1, %s1757_s13 }
  0xbc   : > { %1017 = vrot.lane.b32.xlu1 %v1804_v0, %s1757_s13 }
  0xbd   : > { %v788_v62 = vpop.permute.xlu0 %787  ;;  %v790_v63 = vpop.permute.xlu1 %789  ;;  %v485_v16 = vpack.c.bf16 %v473_v61, %v471_v59  ;;  %v484_v17 = vpack.c.bf16 %v472_v60, %v470_v58 }
  0xbe   : > { %v814_v20 = vsel %vm811_vm2, %v788_v62, %v790_v63  ;;  %v846_v21 = vsel %vm811_vm2, %v790_v63, %v788_v62 }
  0xbf   : > { %1019 = vrot.lane.b32.xlu0 %v1823_v3, %s1757_s13  ;;  %1410 = vmatprep.subr.bf16.mxu1 %v485_v16  ;;  %v869_v26 = vmul.f32 %v2110_v34, %v814_v20  ;;  %v870_v27 = vmul.f32 %v2113_v35, %v846_v21 }
  0xc0   : > { %1021 = vrot.lane.b32.xlu1 %v1810_v2, %s1757_s13  ;;  %1411 = vmatpush1.bf16.msra.mxu1 %v484_v17 }
  0xc1   : > { %v792_v22 = vpop.permute.xlu0 %791  ;;  %v794_v23 = vpop.permute.xlu1 %793 }
  0xc2   : > { %v815_v24 = vsel %vm811_vm2, %v792_v22, %v794_v23  ;;  %v847_v25 = vsel %vm811_vm2, %v794_v23, %v792_v22 }
  0xc3   : > { %v871_v28 = vmul.f32 %v2110_v34, %v815_v24  ;;  %v872_v29 = vmul.f32 %v2113_v35, %v847_v25  ;;  %620 = vrot.lane.b32.xlu0 %v1826_v4, %s1756_s12 }
  0xc4   : > { %622 = vrot.lane.b32.xlu1 %v1833_v5, %s1756_s12 }
  0xc5   : > { %v389_v30 = vpop.permute.xlu0 %388  ;;  %v391_v31 = vpop.permute.xlu1 %390  ;;  %v884_v32 = vpack.c.bf16 %v872_v29, %v870_v27  ;;  %v883_v33 = vpack.c.bf16 %v871_v28, %v869_v26 }
  0xc7   : > { %644 = vrot.lane.b32.xlu0 %v1836_v6, %s1756_s12  ;;  %1463 = vmatprep.subr.bf16.mxu0 %v884_v32 }
  0xc8   : > { %646 = vrot.lane.b32.xlu1 %v1839_v7, %s1756_s12  ;;  %1464 = vmatpush1.bf16.msra.mxu0 %v883_v33 }
  0xc9   : > { %v413_v36 = vpop.permute.xlu0 %412  ;;  %v415_v37 = vpop.permute.xlu1 %414 }
  0xca   : > { %v425_v38 = vsel %vm420_vm1, %v413_v36, %v389_v30  ;;  %v449_v39 = vsel %vm420_vm1, %v389_v30, %v413_v36  ;;  %v426_v40 = vsel %vm420_vm1, %v415_v37, %v391_v31  ;;  %v450_v41 = vsel %vm420_vm1, %v391_v31, %v415_v37 }
  0xcb   : > { %v474_v42 = vmul.f32 %v2087_v50, %v449_v39  ;;  %v475_v43 = vmul.f32 %v2090_v52, %v425_v38  ;;  %v476_v44 = vmul.f32 %v2087_v50, %v450_v41  ;;  %v477_v45 = vmul.f32 %v2090_v52, %v426_v40  ;;  %1023 = vrot.lane.b32.xlu0 %v1836_v6, %s1757_s13 }
  0xcc   : > { %1025 = vrot.lane.b32.xlu1 %v1826_v4, %s1757_s13 }
  0xcd   : > { %v796_v46 = vpop.permute.xlu0 %795  ;;  %v798_v47 = vpop.permute.xlu1 %797  ;;  %v487_v48 = vpack.c.bf16 %v477_v45, %v475_v43  ;;  %v486_v49 = vpack.c.bf16 %v476_v44, %v474_v42  ;;  %v1655_v44 = vld [vmem:[%s2536_s3 + $0x4] sm:$0x3] }
  0xce   : > { %v816_v51 = vsel %vm811_vm2, %v796_v46, %v798_v47  ;;  %v848_v53 = vsel %vm811_vm2, %v798_v47, %v796_v46 }
  0xcf   : > { %1027 = vrot.lane.b32.xlu0 %v1839_v7, %s1757_s13  ;;  %1412 = vmatprep.subr.bf16.mxu1 %v487_v48  ;;  %v873_v58 = vmul.f32 %v2110_v34, %v816_v51  ;;  %v874_v59 = vmul.f32 %v2113_v35, %v848_v53 }
  0xd0   : > { %1029 = vrot.lane.b32.xlu1 %v1833_v5, %s1757_s13  ;;  %1413 = vmatpush1.bf16.msra.mxu1 %v486_v49 }
  0xd1   : > { %v800_v54 = vpop.permute.xlu0 %799  ;;  %v802_v55 = vpop.permute.xlu1 %801 }
  0xd2   : > { %v817_v56 = vsel %vm811_vm2, %v800_v54, %v802_v55  ;;  %v849_v57 = vsel %vm811_vm2, %v802_v55, %v800_v54 }
  0xd3   : > { %v875_v60 = vmul.f32 %v2110_v34, %v817_v56  ;;  %v876_v61 = vmul.f32 %v2113_v35, %v849_v57  ;;  %624 = vrot.lane.b32.xlu0 %v1848_v8, %s1756_s12 }
  0xd4   : > { %626 = vrot.lane.b32.xlu1 %v1851_v9, %s1756_s12 }
  0xd5   : > { %v393_v62 = vpop.permute.xlu0 %392  ;;  %v395_v63 = vpop.permute.xlu1 %394  ;;  %v886_v16 = vpack.c.bf16 %v876_v61, %v874_v59  ;;  %v885_v17 = vpack.c.bf16 %v875_v60, %v873_v58  ;;  %v1659_v61 = vld [vmem:[%s2536_s3 + $0xc] sm:$0x3] }
  0xd7   : > { %648 = vrot.lane.b32.xlu0 %v1854_v10, %s1756_s12  ;;  %1465 = vmatprep.subr.bf16.mxu0 %v886_v16 }
  0xd8   : > { %650 = vrot.lane.b32.xlu1 %v1863_v11, %s1756_s12  ;;  %1466 = vmatpush1.bf16.msra.mxu0 %v885_v17 }
  0xd9   : > { %v417_v20 = vpop.permute.xlu0 %416  ;;  %v419_v21 = vpop.permute.xlu1 %418 }
  0xda   : > { %v427_v22 = vsel %vm420_vm1, %v417_v20, %v393_v62  ;;  %v451_v23 = vsel %vm420_vm1, %v393_v62, %v417_v20  ;;  %v428_v24 = vsel %vm420_vm1, %v419_v21, %v395_v63  ;;  %v452_v25 = vsel %vm420_vm1, %v395_v63, %v419_v21  ;;  %v1731_v20 = vld [vmem:[%s2534_s1 + $0x4] ss:$20 sps:$4 sm:$0xff]   ;;  %v1734_v21 = vld [vmem:[%s2534_s1 + $0xc] ss:$20 sps:$4 sm:$0xff]  }
  0xdb   : > { %v478_v26 = vmul.f32 %v2087_v50, %v451_v23  ;;  %v479_v27 = vmul.f32 %v2090_v52, %v427_v22  ;;  %v480_v28 = vmul.f32 %v2087_v50, %v452_v25  ;;  %v481_v29 = vmul.f32 %v2090_v52, %v428_v24  ;;  %1031 = vrot.lane.b32.xlu0 %v1854_v10, %s1757_s13 }
  0xdc   : > { %1033 = vrot.lane.b32.xlu1 %v1848_v8, %s1757_s13  ;;  %v2262_v22 = vrot.slane %v1659_v61, %v1901_v19  ;;  %v2265_v23 = vrot.slane %v1659_v61, %v1899_v18  ;;  %1432 = vmatprep.mubr.bf16.mxu1 %v1731_v20 }
  0xdd   : > { %v804_v30 = vpop.permute.xlu0 %803  ;;  %v806_v31 = vpop.permute.xlu1 %805  ;;  %v489_v32 = vpack.c.bf16 %v481_v29, %v479_v27  ;;  %v488_v33 = vpack.c.bf16 %v480_v28, %v478_v26  ;;  %1485 = vmatprep.mubr.bf16.mxu0 %v1734_v21 }
  0xde   : > { %v818_v36 = vsel %vm811_vm2, %v804_v30, %v806_v31  ;;  %v850_v50 = vsel %vm811_vm2, %v806_v31, %v804_v30 }
  0xdf   : > { %1035 = vrot.lane.b32.xlu0 %v1863_v11, %s1757_s13  ;;  %1414 = vmatprep.subr.bf16.mxu1 %v489_v32  ;;  %v877_v40 = vmul.f32 %v2110_v34, %v818_v36  ;;  %v878_v41 = vmul.f32 %v2113_v35, %v850_v50 }
  0xe0   : > { %1037 = vrot.lane.b32.xlu1 %v1851_v9, %s1757_s13  ;;  %1415 = vmatpush1.bf16.msra.mxu1 %v488_v33 }
  0xe1   : > { %v808_v52 = vpop.permute.xlu0 %807  ;;  %v810_v37 = vpop.permute.xlu1 %809 }
  0xe2   : > { %v819_v38 = vsel %vm811_vm2, %v808_v52, %v810_v37  ;;  %v851_v39 = vsel %vm811_vm2, %v810_v37, %v808_v52 }
  0xe3   : > { %v879_v42 = vmul.f32 %v2110_v34, %v819_v38  ;;  %v880_v43 = vmul.f32 %v2113_v35, %v851_v39  ;;  %628 = vrot.lane.b32.xlu0 %v1866_v12, %s1756_s12  ;;  %v2233_v34 = vrot.slane %v1655_v44, %v1901_v19  ;;  %v2236_v35 = vrot.slane %v1655_v44, %v1899_v18 }
  0xe4   : > { %630 = vrot.lane.b32.xlu1 %v1869_v13, %s1756_s12 }
  0xe5   : > { %v499_v45 = vpop.permute.xlu0 %498  ;;  %v501_v46 = vpop.permute.xlu1 %500  ;;  %v888_v47 = vpack.c.bf16 %v880_v43, %v878_v41  ;;  %v887_v48 = vpack.c.bf16 %v879_v42, %v877_v40 }
  0xe7   : > { %652 = vrot.lane.b32.xlu0 %v1882_v14, %s1756_s12  ;;  %1467 = vmatprep.subr.bf16.mxu0 %v888_v47 }
  0xe8   : > { %654 = vrot.lane.b32.xlu1 %v1885_v15, %s1756_s12  ;;  %1468 = vmatpush1.bf16.msra.mxu0 %v887_v48 }
  0xe9   : > { %v523_v49 = vpop.permute.xlu0 %522  ;;  %v525_v51 = vpop.permute.xlu1 %524 }
  0xea   : > { %v539_v53 = vsel %vm538_vm3, %v523_v49, %v499_v45  ;;  %v563_v54 = vsel %vm538_vm3, %v499_v45, %v523_v49  ;;  %v540_v55 = vsel %vm538_vm3, %v525_v51, %v501_v46  ;;  %v564_v56 = vsel %vm538_vm3, %v501_v46, %v525_v51 }
  0xeb   : > { %v584_v57 = vmul.f32 %v2233_v34, %v563_v54  ;;  %v585_v58 = vmul.f32 %v2236_v35, %v539_v53  ;;  %v586_v59 = vmul.f32 %v2233_v34, %v564_v56  ;;  %v587_v60 = vmul.f32 %v2236_v35, %v540_v55  ;;  %1039 = vrot.lane.b32.xlu0 %v1882_v14, %s1757_s13 }
  0xec   : > { %1041 = vrot.lane.b32.xlu1 %v1866_v12, %s1757_s13 }
  0xed   : > { %v898_v62 = vpop.permute.xlu0 %897  ;;  %v900_v63 = vpop.permute.xlu1 %899  ;;  %v601_v16 = vpack.c.bf16 %v587_v60, %v585_v58  ;;  %v600_v17 = vpack.c.bf16 %v586_v59, %v584_v57 }
  0xee   : > { %v930_v24 = vsel %vm929_vm4, %v898_v62, %v900_v63  ;;  %v962_v25 = vsel %vm929_vm4, %v900_v63, %v898_v62  ;;  %v1759_v63 = vmov 0  }
  0xef   : > { %1043 = vrot.lane.b32.xlu0 %v1885_v15, %s1757_s13  ;;  %1416 = vmatprep.subr.bf16.mxu1 %v601_v16  ;;  %v983_v30 = vmul.f32 %v2262_v22, %v930_v24  ;;  %v984_v31 = vmul.f32 %v2265_v23, %v962_v25 }
  0xf0   : > { %1045 = vrot.lane.b32.xlu1 %v1869_v13, %s1757_s13  ;;  %1417 = vmatpush1.bf16.msra.mxu1 %v600_v17 }
  0xf1   : > { %v902_v26 = vpop.permute.xlu0 %901  ;;  %v904_v27 = vpop.permute.xlu1 %903  ;;  %1728 = vset.pattern.permute.xlu1 %v1759_v63  ;;  %1727 = vset.pattern.permute.xlu0 %v1759_v63 }
  0xf2   : > { %v931_v28 = vsel %vm929_vm4, %v902_v26, %v904_v27  ;;  %v963_v29 = vsel %vm929_vm4, %v904_v27, %v902_v26 }
  0xf3   : > { %v985_v32 = vmul.f32 %v2262_v22, %v931_v28  ;;  %v986_v33 = vmul.f32 %v2265_v23, %v963_v29  ;;  %1133 = vrot.lane.b32.xlu0 %v1807_v1, %s1758_s23  ;;  %v214_v29 = vld [vmem:[%s2535_s2 + $0x18] sm:$0xff] }
  0xf4   : > { %1135 = vrot.lane.b32.xlu1 %v1804_v0, %s1758_s23 }
  0xf5   : > { %v503_v36 = vpop.permute.xlu0 %502  ;;  %v505_v50 = vpop.permute.xlu1 %504  ;;  %v1000_v52 = vpack.c.bf16 %v986_v33, %v984_v31  ;;  %v999_v37 = vpack.c.bf16 %v985_v32, %v983_v30 }
  0xf7   : > { %1137 = vrot.lane.b32.xlu0 %v1823_v3, %s1758_s23  ;;  %1469 = vmatprep.subr.bf16.mxu0 %v1000_v52 }
  0xf8   : > { %1139 = vrot.lane.b32.xlu1 %v1810_v2, %s1758_s23  ;;  %1470 = vmatpush1.bf16.msra.mxu0 %v999_v37  ;;  %v211_v37 = vld [vmem:[%s2535_s2] sm:$0xff] }
  0xf9   : > { %v527_v38 = vpop.permute.xlu0 %526  ;;  %v529_v39 = vpop.permute.xlu1 %528 }
  0xfa   : > { %v541_v40 = vsel %vm538_vm3, %v527_v38, %v503_v36  ;;  %v565_v1 = vsel %vm538_vm3, %v503_v36, %v527_v38  ;;  %v542_v0 = vsel %vm538_vm3, %v529_v39, %v505_v50  ;;  %v566_v41 = vsel %vm538_vm3, %v505_v50, %v529_v39  ;;  %v212_v50 = vld [vmem:[%s2535_s2 + $0x8] sm:$0xff] }
  0xfb   : > { %v588_v42 = vmul.f32 %v2233_v34, %v565_v1  ;;  %v589_v43 = vmul.f32 %v2236_v35, %v541_v40  ;;  %v590_v3 = vmul.f32 %v2233_v34, %v566_v41  ;;  %v591_v44 = vmul.f32 %v2236_v35, %v542_v0  ;;  %1141 = vrot.lane.b32.xlu0 %v1836_v6, %s1758_s23 }
  0xfc   : > { %1143 = vrot.lane.b32.xlu1 %v1826_v4, %s1758_s23 }
  0xfd   : > { %v906_v2 = vpop.permute.xlu0 %905  ;;  %v908_v45 = vpop.permute.xlu1 %907  ;;  %v603_v46 = vpack.c.bf16 %v591_v44, %v589_v43  ;;  %v602_v47 = vpack.c.bf16 %v590_v3, %v588_v42 }
  0xfe   : > { %v932_v48 = vsel %vm929_vm4, %v906_v2, %v908_v45  ;;  %v964_v49 = vsel %vm929_vm4, %v908_v45, %v906_v2 }
  0xff   : > { %1145 = vrot.lane.b32.xlu0 %v1839_v7, %s1758_s23  ;;  %1418 = vmatprep.subr.bf16.mxu1 %v603_v46  ;;  %v987_v54 = vmul.f32 %v2262_v22, %v932_v48  ;;  %v988_v55 = vmul.f32 %v2265_v23, %v964_v49 }
 0x100   : > { %1147 = vrot.lane.b32.xlu1 %v1833_v5, %s1758_s23  ;;  %1419 = vmatpush1.bf16.msra.mxu1 %v602_v47 }
 0x101   : > { %v910_v6 = vpop.permute.xlu0 %909  ;;  %v912_v51 = vpop.permute.xlu1 %911 }
 0x102   : > { %v933_v4 = vsel %vm929_vm4, %v910_v6, %v912_v51  ;;  %v965_v53 = vsel %vm929_vm4, %v912_v51, %v910_v6 }
 0x103   : > { %v989_v7 = vmul.f32 %v2262_v22, %v933_v4  ;;  %v990_v56 = vmul.f32 %v2265_v23, %v965_v53  ;;  %1149 = vrot.lane.b32.xlu0 %v1854_v10, %s1758_s23 }
 0x104   : > { %1151 = vrot.lane.b32.xlu1 %v1848_v8, %s1758_s23 }
 0x105   : > { %v507_v5 = vpop.permute.xlu0 %506  ;;  %v1002_v57 = vpack.c.bf16 %v990_v56, %v988_v55  ;;  %v1001_v58 = vpack.c.bf16 %v989_v7, %v987_v54 }
 0x106   : > { %v509_v59 = vpop.permute.xlu1 %508 }
 0x107   : > { %1153 = vrot.lane.b32.xlu0 %v1863_v11, %s1758_s23  ;;  %1471 = vmatprep.subr.bf16.mxu0 %v1002_v57  ;;  %v1656_v57 = vld [vmem:[%s2536_s3 + $0x6] sm:$0x3] }
 0x108   : > { %1155 = vrot.lane.b32.xlu1 %v1851_v9, %s1758_s23  ;;  %1472 = vmatpush1.bf16.msra.mxu0 %v1001_v58 }
 0x109   : > { %v531_v60 = vpop.permute.xlu0 %530 }
 0x10a   : > { %v543_v61 = vsel %vm538_vm3, %v531_v60, %v507_v5  ;;  %v567_v10 = vsel %vm538_vm3, %v507_v5, %v531_v60  ;;  %v533_v62 = vpop.permute.xlu1 %532 }
 0x10b   : > { %v592_v8 = vmul.f32 %v2233_v34, %v567_v10  ;;  %v593_v11 = vmul.f32 %v2236_v35, %v543_v61  ;;  %v544_v16 = vsel %vm538_vm3, %v533_v62, %v509_v59  ;;  %v568_v9 = vsel %vm538_vm3, %v509_v59, %v533_v62  ;;  %1157 = vrot.lane.b32.xlu0 %v1882_v14, %s1758_s23  ;;  %v213_v14 = vld [vmem:[%s2535_s2 + $0x10] sm:$0xff] }
 0x10c   : > { %v594_v17 = vmul.f32 %v2233_v34, %v568_v9  ;;  %v595_v20 = vmul.f32 %v2236_v35, %v544_v16  ;;  %1159 = vrot.lane.b32.xlu1 %v1866_v12, %s1758_s23  ;;  %v2377_v10 = vrot.slane %v1656_v57, %v1901_v19  ;;  %v2380_v62 = vrot.slane %v1656_v57, %v1899_v18 }
 0x10d   : > { %v914_v21 = vpop.permute.xlu0 %913 }
 0x10e   : > { %v916_v24 = vpop.permute.xlu1 %915  ;;  %v605_v25 = vpack.c.bf16 %v595_v20, %v593_v11  ;;  %v604_v26 = vpack.c.bf16 %v594_v17, %v592_v8 }
 0x10f   : > { %1161 = vrot.lane.b32.xlu0 %v1885_v15, %s1758_s23  ;;  %v934_v27 = vsel %vm929_vm4, %v914_v21, %v916_v24  ;;  %v966_v28 = vsel %vm929_vm4, %v916_v24, %v914_v21 }
 0x110   : > { %1163 = vrot.lane.b32.xlu1 %v1869_v13, %s1758_s23  ;;  %1420 = vmatprep.subr.bf16.mxu1 %v605_v25  ;;  %v991_v31 = vmul.f32 %v2262_v22, %v934_v27  ;;  %v992_v32 = vmul.f32 %v2265_v23, %v966_v28 }
 0x111   : > { %1421 = vmatpush1.bf16.msra.mxu1 %v604_v26  ;;  %v918_v12 = vpop.permute.xlu0 %917  ;;  %v1660_v26 = vld [vmem:[%s2536_s3 + $0xe] sm:$0x3] }
 0x112   : > { %v920_v30 = vpop.permute.xlu1 %919 }
 0x113   : > { %v935_v15 = vsel %vm929_vm4, %v918_v12, %v920_v30  ;;  %v967_v13 = vsel %vm929_vm4, %v920_v30, %v918_v12  ;;  %1335 = vperm.xlu0 %1727, %v213_v14   ;;  %v2394_v12 = vrot.slane %v1660_v26, %v1901_v19 }
 0x114   : > { %v993_v33 = vmul.f32 %v2262_v22, %v935_v15  ;;  %v994_v36 = vmul.f32 %v2265_v23, %v967_v13  ;;  %1340 = vperm.xlu1 %1728, %v214_v29   ;;  %v2397_v29 = vrot.slane %v1660_v26, %v1899_v18 }
 0x115   : > { %v511_v52 = vpop.permute.xlu0 %510 }
 0x116   : > { %v513_v38 = vpop.permute.xlu1 %512  ;;  %v1004_v39 = vpack.c.bf16 %v994_v36, %v992_v32  ;;  %v1003_v40 = vpack.c.bf16 %v993_v33, %v991_v31 }
 0x117   : > { %1330 = vperm.xlu0 %1727, %v212_v50  }
 0x118   : > { %1473 = vmatprep.subr.bf16.mxu0 %v1004_v39  ;;  %1325 = vperm.xlu1 %1728, %v211_v37  }
 0x119   : > { %1474 = vmatpush1.bf16.msra.mxu0 %v1003_v40  ;;  %v535_v1 = vpop.permute.xlu0 %534 }
 0x11a   : > { %v545_v0 = vsel %vm538_vm3, %v535_v1, %v511_v52  ;;  %v569_v41 = vsel %vm538_vm3, %v511_v52, %v535_v1  ;;  %v537_v42 = vpop.permute.xlu1 %536 }
 0x11b   : > { %v596_v43 = vmul.f32 %v2233_v34, %v569_v41  ;;  %v597_v3 = vmul.f32 %v2236_v35, %v545_v0  ;;  %v546_v44 = vsel %vm538_vm3, %v537_v42, %v513_v38  ;;  %v570_v2 = vsel %vm538_vm3, %v513_v38, %v537_v42 }
 0x11c   : > { %v598_v45 = vmul.f32 %v2233_v34, %v570_v2  ;;  %v599_v46 = vmul.f32 %v2236_v35, %v546_v44 }
 0x11d   : > { %v922_v47 = vpop.permute.xlu0 %921 }
 0x11e   : > { %v924_v48 = vpop.permute.xlu1 %923  ;;  %v607_v49 = vpack.c.bf16 %v599_v46, %v597_v3  ;;  %v606_v6 = vpack.c.bf16 %v598_v45, %v596_v43 }
 0x11f   : > { %v936_v51 = vsel %vm929_vm4, %v922_v47, %v924_v48  ;;  %v968_v4 = vsel %vm929_vm4, %v924_v48, %v922_v47 }
 0x120   : > { %1422 = vmatprep.subr.bf16.mxu1 %v607_v49  ;;  %v995_v34 = vmul.f32 %v2262_v22, %v936_v51  ;;  %v996_v35 = vmul.f32 %v2265_v23, %v968_v4 }
 0x121   : > { %1423 = vmatpush1.bf16.msra.mxu1 %v606_v6  ;;  %v926_v53 = vpop.permute.xlu0 %925 }
 0x122   : > { %v928_v54 = vpop.permute.xlu1 %927 }
 0x123   : > { %v937_v55 = vsel %vm929_vm4, %v926_v53, %v928_v54  ;;  %v969_v7 = vsel %vm929_vm4, %v928_v54, %v926_v53 }
 0x124   : > { %v997_v56 = vmul.f32 %v2262_v22, %v937_v55  ;;  %v998_v5 = vmul.f32 %v2265_v23, %v969_v7 }
 0x125   : > { %v617_v58 = vpop.permute.xlu0 %616 }
 0x126   : > { %v619_v59 = vpop.permute.xlu1 %618  ;;  %v1006_v60 = vpack.c.bf16 %v998_v5, %v996_v35  ;;  %v1005_v61 = vpack.c.bf16 %v997_v56, %v995_v34 }
 0x128   : > { %1475 = vmatprep.subr.bf16.mxu0 %v1006_v60 }
 0x129   : > { %1476 = vmatpush1.bf16.msra.mxu0 %v1005_v61  ;;  %v641_v22 = vpop.permute.xlu0 %640 }
 0x12a   : > { %v657_v23 = vsel %vm656_vm5, %v641_v22, %v617_v58  ;;  %v681_v8 = vsel %vm656_vm5, %v617_v58, %v641_v22  ;;  %v643_v11 = vpop.permute.xlu1 %642 }
 0x12b   : > { %v702_v16 = vmul.f32 %v2377_v10, %v681_v8  ;;  %v703_v9 = vmul.f32 %v2380_v62, %v657_v23  ;;  %v658_v17 = vsel %vm656_vm5, %v643_v11, %v619_v59  ;;  %v682_v20 = vsel %vm656_vm5, %v619_v59, %v643_v11 }
 0x12c   : > { %v704_v21 = vmul.f32 %v2377_v10, %v682_v20  ;;  %v705_v24 = vmul.f32 %v2380_v62, %v658_v17 }
 0x12d   : > { %v1016_v25 = vpop.permute.xlu0 %1015 }
 0x12e   : > { %v1018_v14 = vpop.permute.xlu1 %1017  ;;  %v719_v27 = vpack.c.bf16 %v705_v24, %v703_v9  ;;  %v718_v28 = vpack.c.bf16 %v704_v21, %v702_v16 }
 0x12f   : > { %v1048_v30 = vsel %vm1047_vm6, %v1016_v25, %v1018_v14  ;;  %v1080_v15 = vsel %vm1047_vm6, %v1018_v14, %v1016_v25 }
 0x130   : > { %1424 = vmatprep.subr.bf16.mxu1 %v719_v27  ;;  %v1101_v36 = vmul.f32 %v2394_v12, %v1048_v30  ;;  %v1102_v50 = vmul.f32 %v2397_v29, %v1080_v15 }
 0x131   : > { %1425 = vmatpush1.bf16.msra.mxu1 %v718_v28  ;;  %v1020_v13 = vpop.permute.xlu0 %1019 }
 0x132   : > { %v1022_v31 = vpop.permute.xlu1 %1021 }
 0x133   : > { %v1049_v32 = vsel %vm1047_vm6, %v1020_v13, %v1022_v31  ;;  %v1081_v33 = vsel %vm1047_vm6, %v1022_v31, %v1020_v13 }
 0x134   : > { %v1103_v52 = vmul.f32 %v2394_v12, %v1049_v32  ;;  %v1104_v37 = vmul.f32 %v2397_v29, %v1081_v33 }
 0x135   : > { %v621_v38 = vpop.permute.xlu0 %620 }
 0x136   : > { %v623_v39 = vpop.permute.xlu1 %622  ;;  %v1118_v40 = vpack.c.bf16 %v1104_v37, %v1102_v50  ;;  %v1117_v1 = vpack.c.bf16 %v1103_v52, %v1101_v36 }
 0x138   : > { %1477 = vmatprep.subr.bf16.mxu0 %v1118_v40 }
 0x139   : > { %1478 = vmatpush1.bf16.msra.mxu0 %v1117_v1  ;;  %v645_v0 = vpop.permute.xlu0 %644 }
 0x13a   : > { %v659_v41 = vsel %vm656_vm5, %v645_v0, %v621_v38  ;;  %v683_v42 = vsel %vm656_vm5, %v621_v38, %v645_v0  ;;  %v647_v43 = vpop.permute.xlu1 %646 }
 0x13b   : > { %v706_v3 = vmul.f32 %v2377_v10, %v683_v42  ;;  %v707_v44 = vmul.f32 %v2380_v62, %v659_v41  ;;  %v660_v2 = vsel %vm656_vm5, %v647_v43, %v623_v39  ;;  %v684_v45 = vsel %vm656_vm5, %v623_v39, %v647_v43 }
 0x13c   : > { %v708_v46 = vmul.f32 %v2377_v10, %v684_v45  ;;  %v709_v47 = vmul.f32 %v2380_v62, %v660_v2 }
 0x13d   : > { %v1024_v48 = vpop.permute.xlu0 %1023 }
 0x13e   : > { %v1026_v49 = vpop.permute.xlu1 %1025  ;;  %v721_v6 = vpack.c.bf16 %v709_v47, %v707_v44  ;;  %v720_v51 = vpack.c.bf16 %v708_v46, %v706_v3 }
 0x13f   : > { %v1050_v4 = vsel %vm1047_vm6, %v1024_v48, %v1026_v49  ;;  %v1082_v53 = vsel %vm1047_vm6, %v1026_v49, %v1024_v48 }
 0x140   : > { %1426 = vmatprep.subr.bf16.mxu1 %v721_v6  ;;  %v1105_v35 = vmul.f32 %v2394_v12, %v1050_v4  ;;  %v1106_v56 = vmul.f32 %v2397_v29, %v1082_v53 }
 0x141   : > { %1427 = vmatpush1.bf16.msra.mxu1 %v720_v51  ;;  %v1028_v54 = vpop.permute.xlu0 %1027  ;;  %v1729_v51 = vld [vmem:[%s2534_s1] ss:$20 sps:$4 sm:$0xff]  }
 0x142   : > { %v1030_v55 = vpop.permute.xlu1 %1029 }
 0x143   : > { %v1051_v7 = vsel %vm1047_vm6, %v1028_v54, %v1030_v55  ;;  %v1083_v34 = vsel %vm1047_vm6, %v1030_v55, %v1028_v54 }
 0x144   : > { %v1107_v5 = vmul.f32 %v2394_v12, %v1051_v7  ;;  %v1108_v57 = vmul.f32 %v2397_v29, %v1083_v34 }
 0x145   : > { %v625_v58 = vpop.permute.xlu0 %624 }
 0x146   : > { %v627_v59 = vpop.permute.xlu1 %626  ;;  %v1120_v60 = vpack.c.bf16 %v1108_v57, %v1106_v56  ;;  %v1119_v61 = vpack.c.bf16 %v1107_v5, %v1105_v35  ;;  %v1661_v57 = vld [vmem:[%s2536_s3 + $0x10] sm:$0x3] }
 0x148   : > { %1479 = vmatprep.subr.bf16.mxu0 %v1120_v60 }
 0x149   : > { %1480 = vmatpush1.bf16.msra.mxu0 %v1119_v61  ;;  %v649_v22 = vpop.permute.xlu0 %648 }
 0x14a   : > { %v661_v23 = vsel %vm656_vm5, %v649_v22, %v625_v58  ;;  %v685_v8 = vsel %vm656_vm5, %v625_v58, %v649_v22  ;;  %v651_v11 = vpop.permute.xlu1 %650  ;;  %v2465_v22 = vrot.slane %v1661_v57, %v1901_v19 }
 0x14b   : > { %v710_v16 = vmul.f32 %v2377_v10, %v685_v8  ;;  %v711_v9 = vmul.f32 %v2380_v62, %v661_v23  ;;  %v662_v17 = vsel %vm656_vm5, %v651_v11, %v627_v59  ;;  %v686_v20 = vsel %vm656_vm5, %v627_v59, %v651_v11  ;;  %v1737_v8 = vld [vmem:[%s2534_s1 + $0x28] ss:$20 sps:$4 sm:$0xff]  }
 0x14c   : > { %v712_v21 = vmul.f32 %v2377_v10, %v686_v20  ;;  %v713_v24 = vmul.f32 %v2380_v62, %v662_v17  ;;  %v2468_v23 = vrot.slane %v1661_v57, %v1899_v18  ;;  %v1738_v18 = vld [vmem:[%s2534_s1 + $0x34] ss:$20 sps:$4 sm:$0xff]  }
 0x14d   : > { %v1032_v25 = vpop.permute.xlu0 %1031 }
 0x14e   : > { %v1034_v26 = vpop.permute.xlu1 %1033  ;;  %v723_v14 = vpack.c.bf16 %v713_v24, %v711_v9  ;;  %v722_v27 = vpack.c.bf16 %v712_v21, %v710_v16 }
 0x14f   : > { %v1052_v28 = vsel %vm1047_vm6, %v1032_v25, %v1034_v26  ;;  %v1084_v30 = vsel %vm1047_vm6, %v1034_v26, %v1032_v25 }
 0x150   : > { %1428 = vmatprep.subr.bf16.mxu1 %v723_v14  ;;  %v1109_v33 = vmul.f32 %v2394_v12, %v1052_v28  ;;  %v1110_v36 = vmul.f32 %v2397_v29, %v1084_v30  ;;  %v1740_v30 = vld [vmem:[%s2534_s1 + $0x30] ss:$20 sps:$4 sm:$0xff]  }
 0x151   : > { %1429 = vmatpush1.bf16.msra.mxu1 %v722_v27  ;;  %v1036_v15 = vpop.permute.xlu0 %1035 }
 0x152   : > { %v1038_v13 = vpop.permute.xlu1 %1037 }
 0x153   : > { %v1053_v31 = vsel %vm1047_vm6, %v1036_v15, %v1038_v13  ;;  %v1085_v32 = vsel %vm1047_vm6, %v1038_v13, %v1036_v15 }
 0x154   : > { %v1111_v50 = vmul.f32 %v2394_v12, %v1053_v31  ;;  %v1112_v52 = vmul.f32 %v2397_v29, %v1085_v32 }
 0x155   : > { %v629_v37 = vpop.permute.xlu0 %628 }
 0x156   : > { %v631_v38 = vpop.permute.xlu1 %630  ;;  %v1122_v39 = vpack.c.bf16 %v1112_v52, %v1110_v36  ;;  %v1121_v40 = vpack.c.bf16 %v1111_v50, %v1109_v33 }
 0x158   : > { %1481 = vmatprep.subr.bf16.mxu0 %v1122_v39 }
 0x159   : > { %1482 = vmatpush1.bf16.msra.mxu0 %v1121_v40  ;;  %v653_v1 = vpop.permute.xlu0 %652 }
 0x15a   : > { %v663_v0 = vsel %vm656_vm5, %v653_v1, %v629_v37  ;;  %v687_v41 = vsel %vm656_vm5, %v629_v37, %v653_v1  ;;  %v655_v42 = vpop.permute.xlu1 %654 }
 0x15b   : > { %v714_v43 = vmul.f32 %v2377_v10, %v687_v41  ;;  %v715_v3 = vmul.f32 %v2380_v62, %v663_v0  ;;  %v664_v44 = vsel %vm656_vm5, %v655_v42, %v631_v38  ;;  %v688_v2 = vsel %vm656_vm5, %v631_v38, %v655_v42 }
 0x15c   : > { %v716_v45 = vmul.f32 %v2377_v10, %v688_v2  ;;  %v717_v46 = vmul.f32 %v2380_v62, %v664_v44  ;;  %v1735_v10 = vld [vmem:[%s2534_s1 + $0x2c] ss:$20 sps:$4 sm:$0xff]  }
 0x15d   : > { %v1040_v47 = vpop.permute.xlu0 %1039 }
 0x15e   : > { %v1042_v48 = vpop.permute.xlu1 %1041  ;;  %v725_v49 = vpack.c.bf16 %v717_v46, %v715_v3  ;;  %v724_v6 = vpack.c.bf16 %v716_v45, %v714_v43 }
 0x15f   : > { %v1054_v4 = vsel %vm1047_vm6, %v1040_v47, %v1042_v48  ;;  %v1086_v53 = vsel %vm1047_vm6, %v1042_v48, %v1040_v47 }
 0x160   : > { %1430 = vmatprep.subr.bf16.mxu1 %v725_v49  ;;  %v1113_v34 = vmul.f32 %v2394_v12, %v1054_v4  ;;  %v1114_v35 = vmul.f32 %v2397_v29, %v1086_v53 }
 0x161   : > { %1431 = vmatpush1.bf16.msra.mxu1 %v724_v6  ;;  %v1044_v54 = vpop.permute.xlu0 %1043 }
 0x162   : > { %v1046_v62 = vpop.permute.xlu1 %1045 }
 0x163   : > { %v1055_v55 = vsel %vm1047_vm6, %v1044_v54, %v1046_v62  ;;  %v1087_v7 = vsel %vm1047_vm6, %v1046_v62, %v1044_v54 }
 0x164   : > { %v1115_v56 = vmul.f32 %v2394_v12, %v1055_v55  ;;  %v1116_v5 = vmul.f32 %v2397_v29, %v1087_v7  ;;  %1433 = vmatmul.mubr.bf16.vlgmr.msra.gmra.mrb[0].mxu1 %v1729_v51  ;;  %v1732_v29 = vld [vmem:[%s2534_s1 + $0x8] ss:$20 sps:$4 sm:$0xff]  }
 0x165   : > { %v1134_v58 = vpop.permute.xlu0 %1133  ;;  %1442 = vmatprep.mubr.bf16.mxu1 %v1735_v10 }
 0x166   : > { %v1136_v59 = vpop.permute.xlu1 %1135  ;;  %v1124_v60 = vpack.c.bf16 %v1116_v5, %v1114_v35  ;;  %v1123_v61 = vpack.c.bf16 %v1115_v56, %v1113_v34 }
 0x167   : > { %v1166_v12 = vsel %vm1165_vm7, %v1134_v58, %v1136_v59  ;;  %v1198_v11 = vsel %vm1165_vm7, %v1136_v59, %v1134_v58  ;;  %v1741_v58 = vld [vmem:[%s2534_s1 + $0x10] ss:$20 sps:$4 sm:$0xff]   ;;  %v1742_v59 = vld [vmem:[%s2534_s1 + $0x38] ss:$20 sps:$4 sm:$0xff]  }
 0x168   : > { %1483 = vmatprep.subr.bf16.mxu0 %v1124_v60  ;;  %v1219_v9 = vmul.f32 %v2465_v22, %v1166_v12  ;;  %v1220_v21 = vmul.f32 %v2468_v23, %v1198_v11 }
 0x169   : > { %1484 = vmatpush1.bf16.msra.mxu0 %v1123_v61  ;;  %v1138_v16 = vpop.permute.xlu0 %1137 }
 0x16a   : > { %v1140_v19 = vpop.permute.xlu1 %1139 }
 0x16b   : > { %v1167_v17 = vsel %vm1165_vm7, %v1138_v16, %v1140_v19  ;;  %v1199_v20 = vsel %vm1165_vm7, %v1140_v19, %v1138_v16 }
 0x16c   : > { %v1221_v24 = vmul.f32 %v2465_v22, %v1167_v17  ;;  %v1222_v25 = vmul.f32 %v2468_v23, %v1199_v20  ;;  %1486 = vmatmul.mubr.bf16.vlgmr.msra.gmra.mrb[0].mxu0 %v1732_v29  ;;  %1443 = vmatmul.mubr.bf16.gmra.mrb[4].mxu1 %v1737_v8 }
 0x16d   : > { %v1142_v26 = vpop.permute.xlu0 %1141  ;;  %1495 = vmatprep.mubr.bf16.mxu0 %v1738_v18  ;;  %1548 = vmatprep.mubr.bf16.mxu1 %v1759_v63 }
 0x16e   : > { %v1235_v14 = vpack.c.bf16 %v1221_v24, %v1219_v9  ;;  %v1144_v27 = vpop.permute.xlu1 %1143  ;;  %v1236_v28 = vpack.c.bf16 %v1222_v25, %v1220_v21 }
 0x16f   : > { %v1168_v15 = vsel %vm1165_vm7, %v1142_v26, %v1144_v27  ;;  %v1200_v13 = vsel %vm1165_vm7, %v1144_v27, %v1142_v26 }
 0x170   : > { %1506 = vmatprep.subr.bf16.mxu0 %v1236_v28  ;;  %1677 = vmatprep.subr.bf16.mxu1 %v1236_v28  ;;  %v1223_v50 = vmul.f32 %v2465_v22, %v1168_v15  ;;  %v1224_v52 = vmul.f32 %v2468_v23, %v1200_v13 }
 0x171   : > { %1507 = vmatpush1.bf16.msra.mxu0 %v1235_v14  ;;  %1681 = vmatpush1.bf16.msra.mxu1 %v1235_v14  ;;  %v1146_v31 = vpop.permute.xlu0 %1145 }
 0x172   : > { %v1148_v32 = vpop.permute.xlu1 %1147 }
 0x173   : > { %v1169_v33 = vsel %vm1165_vm7, %v1146_v31, %v1148_v32  ;;  %v1201_v36 = vsel %vm1165_vm7, %v1148_v32, %v1146_v31 }
 0x174   : > { %v1225_v37 = vmul.f32 %v2465_v22, %v1169_v33  ;;  %v1226_v38 = vmul.f32 %v2468_v23, %v1201_v36  ;;  %1496 = vmatmul.mubr.bf16.gmra.mrb[4].mxu0 %v1740_v30 }
 0x175   : > { %v1150_v39 = vpop.permute.xlu0 %1149  ;;  %1538 = vmatprep.mubr.bf16.mxu0 %v1759_v63 }
 0x176   : > { %v1237_v40 = vpack.c.bf16 %v1225_v37, %v1223_v50  ;;  %v1152_v1 = vpop.permute.xlu1 %1151  ;;  %v1238_v0 = vpack.c.bf16 %v1226_v38, %v1224_v52 }
 0x177   : > { %v1170_v41 = vsel %vm1165_vm7, %v1150_v39, %v1152_v1  ;;  %v1202_v42 = vsel %vm1165_vm7, %v1152_v1, %v1150_v39 }
 0x178   : > { %1508 = vmatprep.subr.bf16.mxu0 %v1238_v0  ;;  %1678 = vmatprep.subr.bf16.mxu1 %v1238_v0  ;;  %v1227_v45 = vmul.f32 %v2465_v22, %v1170_v41  ;;  %v1228_v63 = vmul.f32 %v2468_v23, %v1202_v42 }
 0x179   : > { %1509 = vmatpush1.bf16.msra.mxu0 %v1237_v40  ;;  %1682 = vmatpush1.bf16.msra.mxu1 %v1237_v40  ;;  %v1154_v43 = vpop.permute.xlu0 %1153 }
 0x17a   : > { %v1156_v3 = vpop.permute.xlu1 %1155 }
 0x17b   : > { %v1171_v44 = vsel %vm1165_vm7, %v1154_v43, %v1156_v3  ;;  %v1203_v2 = vsel %vm1165_vm7, %v1156_v3, %v1154_v43 }
 0x17c   : > { %v1229_v46 = vmul.f32 %v2465_v22, %v1171_v44  ;;  %v1230_v47 = vmul.f32 %v2468_v23, %v1203_v2 }
 0x17d   : > { %v1158_v48 = vpop.permute.xlu0 %1157 }
 0x17e   : > { %v1239_v49 = vpack.c.bf16 %v1229_v46, %v1227_v45  ;;  %v1160_v6 = vpop.permute.xlu1 %1159  ;;  %v1240_v51 = vpack.c.bf16 %v1230_v47, %v1228_v63 }
 0x17f   : > { %v1172_v4 = vsel %vm1165_vm7, %v1158_v48, %v1160_v6  ;;  %v1204_v53 = vsel %vm1165_vm7, %v1160_v6, %v1158_v48 }
 0x180   : > { %1510 = vmatprep.subr.bf16.mxu0 %v1240_v51  ;;  %1679 = vmatprep.subr.bf16.mxu1 %v1240_v51  ;;  %v1231_v7 = vmul.f32 %v2465_v22, %v1172_v4  ;;  %v1232_v34 = vmul.f32 %v2468_v23, %v1204_v53 }
 0x181   : > { %1511 = vmatpush1.bf16.msra.mxu0 %v1239_v49  ;;  %1683 = vmatpush1.bf16.msra.mxu1 %v1239_v49  ;;  %v1162_v54 = vpop.permute.xlu0 %1161 }
 0x182   : > { %v1164_v10 = vpop.permute.xlu1 %1163 }
 0x183   : > { %v1173_v62 = vsel %vm1165_vm7, %v1162_v54, %v1164_v10  ;;  %v1205_v55 = vsel %vm1165_vm7, %v1164_v10, %v1162_v54 }
 0x184   : > { %v1233_v35 = vmul.f32 %v2465_v22, %v1173_v62  ;;  %v1234_v56 = vmul.f32 %v2468_v23, %v1205_v55 }
 0x186   : > { %v1241_v5 = vpack.c.bf16 %v1233_v35, %v1231_v7  ;;  %v1242_v57 = vpack.c.bf16 %v1234_v56, %v1232_v34 }
 0x188   : > { %1512 = vmatprep.subr.bf16.mxu0 %v1242_v57  ;;  %1680 = vmatprep.subr.bf16.mxu1 %v1242_v57 }
 0x189   : > { %1513 = vmatpush1.bf16.msra.mxu0 %v1241_v5  ;;  %1684 = vmatpush1.bf16.msra.mxu1 %v1241_v5 }
 0x18c   : > { %1672 = vmatmul.mubr.msk.bf16.vlgmr.msra.gmra.mrb[0].mxu0 %vm1393_vm8, %v1741_v58  ;;  %1673 = vmatmul.mubr.msk.bf16.vlgmr.msra.gmra.mrb[8].mxu1 %vm1393_vm8, %v1742_v59 }
 0x192   : > { %v1336_v16 = vpop.permute.xlu0 %1335 }
 0x193   : > { %v1341_v19 = vpop.permute.xlu1 %1340 }
 0x196   : > { %v1331_v13 = vpop.permute.xlu0 %1330 }
 0x197   : > { %v1326_v15 = vpop.permute.xlu1 %1325 }
 0x237   : > { %v1434_v60 = vpop.f32.mrb[0].mxu1 }
 0x238   : > { %v1436_v61 = vpop.f32.mrb[1].mxu1  ;;  %v1435_v31 = vadd.f32 %v1434_v60, %v1326_v15 }
 0x239   : > { %v1438_v22 = vpop.f32.mrb[2].mxu1  ;;  %v1437_v32 = vadd.f32 %v1436_v61, %v1326_v15 }
 0x23a   : > { %v1440_v23 = vpop.f32.mrb[3].mxu1  ;;  %v1439_v39 = vadd.f32 %v1438_v22, %v1331_v13 }
 0x23b   : > { %v1441_v40 = vadd.f32 %v1440_v23, %v1331_v13 }
 0x23f   : > { %v1444_v12 = vpop.f32.mrb[4].mxu1 }
 0x240   : > { %v1446_v29 = vpop.f32.mrb[5].mxu1  ;;  %v1445_v18 = vadd.f32 %v1444_v12, %v1336_v16 }
 0x241   : > { %v1448_v8 = vpop.f32.mrb[6].mxu1  ;;  %v1447_v9 = vadd.f32 %v1446_v29, %v1336_v16 }
 0x242   : > { %v1450_v11 = vpop.f32.mrb[7].mxu1  ;;  %v1449_v17 = vadd.f32 %v1448_v8, %v1341_v19 }
 0x243   : > { %v1451_v21 = vadd.f32 %v1450_v11, %v1341_v19 }
 0x247   : > { %v1497_v20 = vpop.f32.mrb[4].mxu0 }
 0x248   : > { %v1498_v24 = vadd.f32 %v1497_v20, %v1445_v18  ;;  %v1499_v25 = vpop.f32.mrb[5].mxu0 }
 0x249   : > { %v1500_v26 = vadd.f32 %v1499_v25, %v1447_v9  ;;  %v1501_v14 = vpop.f32.mrb[6].mxu0 }
 0x24a   : > { %v1502_v27 = vadd.f32 %v1501_v14, %v1449_v17  ;;  %v1503_v28 = vpop.f32.mrb[7].mxu0 }
 0x24b   : > { %v1504_v30 = vadd.f32 %v1503_v28, %v1451_v21 }
 0x25f   : > { %v1540_v33 = vpop.f32.mrb[0].mxu0  ;;  %v1550_v36 = vpop.f32.mrb[8].mxu1 }
 0x260   : > { %v1686_v50 = vadd.f32 %v1540_v33, %v1435_v31  ;;  %v1551_v52 = vadd.f32 %v1550_v36, %v1498_v24  ;;  %v1542_v37 = vpop.f32.mrb[1].mxu0  ;;  %v1552_v38 = vpop.f32.mrb[9].mxu1 }
 0x261   : > { %v1688_v1 = vadd.f32 %v1542_v37, %v1437_v32  ;;  %v1553_v0 = vadd.f32 %v1552_v38, %v1500_v26  ;;  %v1544_v41 = vpop.f32.mrb[2].mxu0  ;;  %v1554_v42 = vpop.f32.mrb[10].mxu1 }
 0x262   : > { %vm1559_vm9 = vcmp.ge.f32.partialorder %v1686_v50, 0.0  ;;  %v1567_v43 = vmul.f32 0.1, %v1686_v50  ;;  %vm1563_vm10 = vcmp.ge.f32.partialorder %v1551_v52, 0.0  ;;  %v1571_v3 = vmul.f32 0.1, %v1551_v52 }
 0x263   : > { %vm1560_vm11 = vcmp.ge.f32.partialorder %v1688_v1, 0.0  ;;  %v1568_v44 = vmul.f32 0.1, %v1688_v1  ;;  %vm1564_vm12 = vcmp.ge.f32.partialorder %v1553_v0, 0.0  ;;  %v1572_v2 = vmul.f32 0.1, %v1553_v0 }
 0x264   : > { %v1575_v45 = vsel %vm1559_vm9, %v1686_v50, %v1567_v43  ;;  %v1579_v63 = vsel %vm1563_vm10, %v1551_v52, %v1571_v3  ;;  %v1690_v46 = vadd.f32 %v1544_v41, %v1439_v39  ;;  %v1555_v47 = vadd.f32 %v1554_v42, %v1502_v27  ;;  %v1546_v48 = vpop.f32.mrb[3].mxu0  ;;  %v1556_v49 = vpop.f32.mrb[11].mxu1 }
 0x265   : > { %1583 = vst [vmem:[%s1801_s24 + $0x80] sm:$0xff] %v1575_v45  ;;  %1587 = vst [vmem:[%s1801_s24 + $0xa0] sm:$0xff] %v1579_v63  ;;  %v1576_v6 = vsel %vm1560_vm11, %v1688_v1, %v1568_v44  ;;  %v1580_v51 = vsel %vm1564_vm12, %v1553_v0, %v1572_v2  ;;  %v1692_v4 = vadd.f32 %v1546_v48, %v1441_v40 }
 0x266   : > { %v1557_v53 = vadd.f32 %v1556_v49, %v1504_v30  ;;  %1584 = vst [vmem:[%s1801_s24 + $0x88] sm:$0xff] %v1576_v6  ;;  %1588 = vst [vmem:[%s1801_s24 + $0xa8] sm:$0xff] %v1580_v51  ;;  %vm1561_vm13 = vcmp.ge.f32.partialorder %v1690_v46, 0.0  ;;  %v1569_v54 = vmul.f32 0.1, %v1690_v46  ;;  %vm1565_vm14 = vcmp.ge.f32.partialorder %v1555_v47, 0.0 }
 0x267   : > { %v1573_v10 = vmul.f32 0.1, %v1555_v47  ;;  %vm1562_vm15 = vcmp.ge.f32.partialorder %v1692_v4, 0.0  ;;  %v1570_v62 = vmul.f32 0.1, %v1692_v4 }
 0x268   : > { %vm1566_vm0 = vcmp.ge.f32.partialorder %v1557_v53, 0.0  ;;  %v1574_v55 = vmul.f32 0.1, %v1557_v53  ;;  %v1577_v7 = vsel %vm1561_vm13, %v1690_v46, %v1569_v54 }
 0x269   : > { %v1581_v34 = vsel %vm1565_vm14, %v1555_v47, %v1573_v10  ;;  %1585 = vst [vmem:[%s1801_s24 + $0x90] sm:$0xff] %v1577_v7  ;;  %v1578_v35 = vsel %vm1562_vm15, %v1692_v4, %v1570_v62 }
 0x26a   : > { %1589 = vst [vmem:[%s1801_s24 + $0xb0] sm:$0xff] %v1581_v34  ;;  %v1582_v56 = vsel %vm1566_vm0, %v1557_v53, %v1574_v55  ;;  %1586 = vst [vmem:[%s1801_s24 + $0x98] sm:$0xff] %v1578_v35 }
 0x26b   : > { %1590 = vst [vmem:[%s1801_s24 + $0xb8] sm:$0xff] %v1582_v56 }
 0x26c PF: > { %s14_s15 = sadd.s32 1, %s1749_s15  }
 0x26d   : > { %p11_p4 = scmp.ge.s32.totalorder %s14_s15, 4  }
 0x26f   :  { %13 = sbr.rel (!%p11_p4) target bundleno = 1 (0x1), region = 74 }

</bundles_post_ra>
